<compile_context>
chip_gen: v5e
topology: v5e:2x2
jax: 0.10.0
libtpu: 0.0.40
codegen_flags: <defaults>
</compile_context>

<pallas_src>
from functools import partial

import jax
import jax.numpy as jnp
from jax.experimental import pallas as pl
from jax.experimental.pallas import tpu as pltpu


_TAPS = tuple((dh, dw) for dh in range(3) for dw in range(3))
_C_IMG = 3     # image channels
_C_LID = 1     # lidar channels
_C_MID = 8     # per-branch feature channels
_C_FUSE = 2 * _C_MID


# -----------------------------------------------------------------------------
# Fused DepthNet kernel: conv+ReLU (img) -> conv+ReLU (lidar) -> concat
# -> fuse conv -> depth, all in a single grid step with VMEM-resident data.
# -----------------------------------------------------------------------------
def _depthnet_kernel(img_ref, lid_ref,
                     wi_ref, bi_ref, wl_ref, bl_ref, wf_ref, bf_ref,
                     cm1_ref, cm2_ref, int1_ref,
                     out_ref, *, H, W):
    M = H * W
    P = W + 1                 # halo width consumed by one 3x3 conv layer
    Mp1 = M + 2 * P           # feature maps carry a 1-conv halo

    img = img_ref[...]        # (3, Mp2) zero-halo flattened image
    lid = lid_ref[...]        # (1, Mp2) zero-halo flattened lidar
    cm1 = cm1_ref[...]        # (3, Mp1) per-tap column masks (branch convs)
    cm2 = cm2_ref[...]        # (3, M)   per-tap column masks (fuse conv)
    int1 = int1_ref[...]      # (1, Mp1) interior mask for feature maps

    def conv3x3_branch(x, w_ref, b_ref):
        # x: (Cin, Mp2) zero-halo input.  Returns the ReLU feature map at
        # (Cout, Mp1) with a zero halo so it can feed the next 3x3 conv.
        acc = None
        for t, (dh, dw) in enumerate(_TAPS):
            start = dh * W + dw                 # = P + (dh-1)*W + (dw-1)
            xs = x[:, start:start + Mp1] * cm1[dw:dw + 1, :]
            part = jnp.dot(w_ref[t], xs, preferred_element_type=jnp.float32)
            acc = part if acc is None else acc + part
        return jnp.maximum((acc + b_ref[...]) * int1, 0.0)

    img_feat = conv3x3_branch(img, wi_ref, bi_ref)          # (8, Mp1)
    lid_feat = conv3x3_branch(lid, wl_ref, bl_ref)          # (8, Mp1)
    fused = jnp.concatenate([img_feat, lid_feat], axis=0)   # (16, Mp1), VMEM only

    acc = None
    for t, (dh, dw) in enumerate(_TAPS):
        start = dh * W + dw
        xs = fused[:, start:start + M] * cm2[dw:dw + 1, :]
        part = jnp.dot(wf_ref[t], xs, preferred_element_type=jnp.float32)
        acc = part if acc is None else acc + part
    out_ref[...] = (acc + bf_ref[...]).astype(out_ref.dtype)  # (1, M) lane-dense


# -----------------------------------------------------------------------------
# Host-side prep: per-tap weight layout, column / interior masks, halo padding.
# -----------------------------------------------------------------------------
def _taps_layout(w_oihw):
    """[Cout, Cin, 3, 3] -> [9, Cout, Cin] with tap index t = dh*3 + dw."""
    cout, cin = w_oihw.shape[0], w_oihw.shape[1]
    return jnp.transpose(w_oihw, (2, 3, 0, 1)).reshape(9, cout, cin)


def _build_masks(h, w):
    m = h * w
    p = w + 1
    mp1 = m + 2 * p

    q = jnp.arange(mp1)
    c1 = (q - p) % w
    cm1 = jnp.stack([(c1 > 0).astype(jnp.float32),
                     jnp.ones((mp1,), jnp.float32),
                     (c1 < w - 1).astype(jnp.float32)])        # (3, mp1)
    int1 = ((q >= p) & (q < p + m)).astype(jnp.float32)[None, :]

    mm = jnp.arange(m)
    c2 = mm % w
    cm2 = jnp.stack([(c2 > 0).astype(jnp.float32),
                     jnp.ones((m,), jnp.float32),
                     (c2 < w - 1).astype(jnp.float32)])        # (3, m)
    return cm1, cm2, int1


def _pad_halo(x_cm, p):
    """(C, M) -> (C, M + 4p) zero-halo row (2-conv halo on each side)."""
    return jnp.pad(x_cm, ((0, 0), (2 * p, 2 * p)))


def depthnet_fused(params, image, lidar, *, h, w):
    M = h * w
    P = w + 1
    Mp1 = M + 2 * P
    Mp2 = M + 4 * P

    img_pad = _pad_halo(image.reshape(_C_IMG, M).astype(jnp.float32), P)
    lid_pad = _pad_halo(lidar.reshape(_C_LID, M).astype(jnp.float32), P)

    wi = _taps_layout(params["img_w"])            # (9, 8, 3)
    wl = _taps_layout(params["lid_w"])            # (9, 8, 1)
    wf = _taps_layout(params["fuse_w"])           # (9, 1, 16)
    bi = params["img_b"].reshape(_C_MID, 1)
    bl = params["lid_b"].reshape(_C_MID, 1)
    bf = params["fuse_b"].reshape(1, 1)
    cm1, cm2, int1 = _build_masks(h, w)

    flops = 2 * M * 9 * (_C_IMG * _C_MID + _C_LID * _C_MID + _C_FUSE * 1)
    bytes_accessed = 4 * (img_pad.size + lid_pad.size + wi.size + wl.size +
                          wf.size + bi.size + bl.size + bf.size +
                          cm1.size + cm2.size + int1.size + M)

    in_specs = [
        pl.BlockSpec((_C_IMG, Mp2),       lambda i: (0, 0)),      # image (padded)
        pl.BlockSpec((_C_LID, Mp2),       lambda i: (0, 0)),      # lidar (padded)
        pl.BlockSpec((9, _C_MID, _C_IMG), lambda i: (0, 0, 0)),   # wi
        pl.BlockSpec((_C_MID, 1),         lambda i: (0, 0)),      # bi
        pl.BlockSpec((9, _C_MID, _C_LID), lambda i: (0, 0, 0)),   # wl
        pl.BlockSpec((_C_MID, 1),         lambda i: (0, 0)),      # bl
        pl.BlockSpec((9, 1, _C_FUSE),     lambda i: (0, 0, 0)),   # wf
        pl.BlockSpec((1, 1),              lambda i: (0, 0)),      # bf
        pl.BlockSpec((3, Mp1),            lambda i: (0, 0)),      # cm1
        pl.BlockSpec((3, M),              lambda i: (0, 0)),      # cm2
        pl.BlockSpec((1, Mp1),            lambda i: (0, 0)),      # int1
    ]

    out = pl.pallas_call(
        partial(_depthnet_kernel, H=h, W=w),
        out_shape=jax.ShapeDtypeStruct((1, M), jnp.float32),
        grid=(1,),
        in_specs=in_specs,
        out_specs=pl.BlockSpec((1, M), lambda i: (0, 0)),
        compiler_params=pltpu.CompilerParams(
            dimension_semantics=("arbitrary",),
            vmem_limit_bytes=32 * 1024 * 1024,   # explicit budget (v7x-safe)
        ),
        cost_estimate=pl.CostEstimate(
            flops=int(flops), transcendentals=0,
            bytes_accessed=int(bytes_accessed)),
    )(img_pad, lid_pad, wi, bi, wl, bl, wf, bf, cm1, cm2, int1)

    return out.reshape(1, 1, h, w)


# -----------------------------------------------------------------------------
# DepthNet stand-in parameters (deterministic init) + model_banch.forward
# -----------------------------------------------------------------------------
def init_depthnet_params(key):
    k1, k2, k3 = jax.random.split(key, 3)
    scale = 0.1
    return {
        "img_w": scale * jax.random.normal(k1, (_C_MID, _C_IMG, 3, 3), jnp.float32),
        "img_b": jnp.zeros((_C_MID,), jnp.float32),
        "lid_w": scale * jax.random.normal(k2, (_C_MID, _C_LID, 3, 3), jnp.float32),
        "lid_b": jnp.zeros((_C_MID,), jnp.float32),
        "fuse_w": scale * jax.random.normal(k3, (1, _C_FUSE, 3, 3), jnp.float32),
        "fuse_b": jnp.zeros((1,), jnp.float32),
    }


def model_banch_forward(params, x, rng_key, *, spatial=(16, 16)):
    # Mirrors the PyTorch forward: `x` is ignored; fresh random image/lidar
    # (torch.rand equivalent, uniform [0,1)) are drawn and fed to the DepthNet
    # stand-in.  The reference forward returns None; we return the depth map
    # so the computation can be blocked on / inspected.
    del x
    h, w = spatial
    k_img, k_lid = jax.random.split(rng_key)
    image = jax.random.uniform(k_img, (1, _C_IMG, h, w), jnp.float32)
    # TODO(synk): cfg.lidar shape is external to the snippet; assume [1, H, W].
    lidar = jax.random.uniform(k_lid, (1, _C_LID, h, w), jnp.float32)
    return depthnet_fused(params, image, lidar, h=h, w=w)


if __name__ == "__main__":
    key = jax.random.PRNGKey(0)
    k_params, k_x, k_rand = jax.random.split(key, 3)

    params = init_depthnet_params(k_params)
    # Small, module-consistent shapes: image [1, 3, 16, 16] (vs 228x304 in the ref).
    x_unused = jax.random.normal(k_x, (1, 3, 16, 16), jnp.float32)

    out = model_banch_forward(params, x_unused, k_rand, spatial=(16, 16))
    out = jax.block_until_ready(out)
    assert out.shape == (1, 1, 16, 16)
    assert bool(jnp.all(jnp.isfinite(out)))
    assert bool(jnp.any(out != 0.0))
    print("KERNEL_OK")
</pallas_src>

<mosaic_0001>
module attributes {stable_mosaic.version = 11 : i64} {
  func.func @_depthnet_kernel(%arg0: i32, %arg1: memref<3x324xf32, #tpu.memory_space<vmem>>, %arg2: memref<1x324xf32, #tpu.memory_space<vmem>>, %arg3: memref<9x8x3xf32, #tpu.memory_space<vmem>>, %arg4: memref<8x1xf32, #tpu.memory_space<vmem>>, %arg5: memref<9x8x1xf32, #tpu.memory_space<vmem>>, %arg6: memref<8x1xf32, #tpu.memory_space<vmem>>, %arg7: memref<9x1x16xf32, #tpu.memory_space<vmem>>, %arg8: memref<1x1xf32, #tpu.memory_space<vmem>>, %arg9: memref<3x290xf32, #tpu.memory_space<vmem>>, %arg10: memref<3x256xf32, #tpu.memory_space<vmem>>, %arg11: memref<1x290xf32, #tpu.memory_space<vmem>>, %arg12: memref<1x256xf32, #tpu.memory_space<vmem>>) attributes {dimension_semantics = [#tpu.dimension_semantics<arbitrary>], iteration_bounds = array<i64: 1>, scalar_prefetch = 0 : i64, scratch_operands = 0 : i64, tpu.core_type = #tpu.core_type<tc>, window_params = [{pipeline_mode = #tpu.pipeline_mode<synchronous>, transform_indices = @transform_0, window_bounds = array<i64: 3, 324>}, {pipeline_mode = #tpu.pipeline_mode<synchronous>, transform_indices = @transform_1, window_bounds = array<i64: 1, 324>}, {pipeline_mode = #tpu.pipeline_mode<synchronous>, transform_indices = @transform_2, window_bounds = array<i64: 9, 8, 3>}, {pipeline_mode = #tpu.pipeline_mode<synchronous>, transform_indices = @transform_3, window_bounds = array<i64: 8, 1>}, {pipeline_mode = #tpu.pipeline_mode<synchronous>, transform_indices = @transform_4, window_bounds = array<i64: 9, 8, 1>}, {pipeline_mode = #tpu.pipeline_mode<synchronous>, transform_indices = @transform_5, window_bounds = array<i64: 8, 1>}, {pipeline_mode = #tpu.pipeline_mode<synchronous>, transform_indices = @transform_6, window_bounds = array<i64: 9, 1, 16>}, {pipeline_mode = #tpu.pipeline_mode<synchronous>, transform_indices = @transform_7, window_bounds = array<i64: 1, 1>}, {pipeline_mode = #tpu.pipeline_mode<synchronous>, transform_indices = @transform_8, window_bounds = array<i64: 3, 290>}, {pipeline_mode = #tpu.pipeline_mode<synchronous>, transform_indices = @transform_9, window_bounds = array<i64: 3, 256>}, {pipeline_mode = #tpu.pipeline_mode<synchronous>, transform_indices = @transform_10, window_bounds = array<i64: 1, 290>}, {pipeline_mode = #tpu.pipeline_mode<synchronous>, transform_indices = @transform_11, window_bounds = array<i64: 1, 256>}]} {
    %c0 = arith.constant 0 : index
    %c0_0 = arith.constant 0 : index
    %0 = vector.load %arg1[%c0, %c0_0] : memref<3x324xf32, #tpu.memory_space<vmem>>, vector<3x324xf32>
    %c0_1 = arith.constant 0 : index
    %c0_2 = arith.constant 0 : index
    %1 = vector.load %arg2[%c0_1, %c0_2] : memref<1x324xf32, #tpu.memory_space<vmem>>, vector<1x324xf32>
    %c0_3 = arith.constant 0 : index
    %c0_4 = arith.constant 0 : index
    %2 = vector.load %arg9[%c0_3, %c0_4] : memref<3x290xf32, #tpu.memory_space<vmem>>, vector<3x290xf32>
    %c0_5 = arith.constant 0 : index
    %c0_6 = arith.constant 0 : index
    %3 = vector.load %arg10[%c0_5, %c0_6] : memref<3x256xf32, #tpu.memory_space<vmem>>, vector<3x256xf32>
    %c0_7 = arith.constant 0 : index
    %c0_8 = arith.constant 0 : index
    %4 = vector.load %arg11[%c0_7, %c0_8] : memref<1x290xf32, #tpu.memory_space<vmem>>, vector<1x290xf32>
    %5 = vector.extract_strided_slice %0 {offsets = [0, 0], sizes = [3, 290], strides = [1, 1]} : vector<3x324xf32> to vector<3x290xf32>
    %6 = vector.extract_strided_slice %2 {offsets = [0, 0], sizes = [1, 290], strides = [1, 1]} : vector<3x290xf32> to vector<1x290xf32>
    %7 = vector.broadcast %6 : vector<1x290xf32> to vector<3x290xf32>
    %8 = arith.mulf %5, %7 : vector<3x290xf32>
    %c0_9 = arith.constant 0 : index
    %c0_10 = arith.constant 0 : index
    %c0_11 = arith.constant 0 : index
    %9 = vector.load %arg3[%c0_9, %c0_10, %c0_11] : memref<9x8x3xf32, #tpu.memory_space<vmem>>, vector<1x8x3xf32>
    %10 = vector.shape_cast %9 : vector<1x8x3xf32> to vector<8x3xf32>
    %cst = arith.constant dense<0.000000e+00> : vector<8x290xf32>
    %11 = tpu.matmul %10, %8, %cst {dimension_numbers = #tpu.dot_dimension_numbers<[1], [0], [0], [1], [0, 0, 1, 1], [], []>} : vector<8x3xf32>, vector<3x290xf32>, vector<8x290xf32> -> vector<8x290xf32>
    %12 = vector.extract_strided_slice %0 {offsets = [0, 1], sizes = [3, 290], strides = [1, 1]} : vector<3x324xf32> to vector<3x290xf32>
    %13 = vector.extract_strided_slice %2 {offsets = [1, 0], sizes = [1, 290], strides = [1, 1]} : vector<3x290xf32> to vector<1x290xf32>
    %14 = vector.broadcast %13 : vector<1x290xf32> to vector<3x290xf32>
    %15 = arith.mulf %12, %14 : vector<3x290xf32>
    %c1 = arith.constant 1 : index
    %c0_12 = arith.constant 0 : index
    %c0_13 = arith.constant 0 : index
    %16 = vector.load %arg3[%c1, %c0_12, %c0_13] : memref<9x8x3xf32, #tpu.memory_space<vmem>>, vector<1x8x3xf32>
    %17 = vector.shape_cast %16 : vector<1x8x3xf32> to vector<8x3xf32>
    %cst_14 = arith.constant dense<0.000000e+00> : vector<8x290xf32>
    %18 = tpu.matmul %17, %15, %cst_14 {dimension_numbers = #tpu.dot_dimension_numbers<[1], [0], [0], [1], [0, 0, 1, 1], [], []>} : vector<8x3xf32>, vector<3x290xf32>, vector<8x290xf32> -> vector<8x290xf32>
    %19 = arith.addf %11, %18 : vector<8x290xf32>
    %20 = vector.extract_strided_slice %0 {offsets = [0, 2], sizes = [3, 290], strides = [1, 1]} : vector<3x324xf32> to vector<3x290xf32>
    %21 = vector.extract_strided_slice %2 {offsets = [2, 0], sizes = [1, 290], strides = [1, 1]} : vector<3x290xf32> to vector<1x290xf32>
    %22 = vector.broadcast %21 : vector<1x290xf32> to vector<3x290xf32>
    %23 = arith.mulf %20, %22 : vector<3x290xf32>
    %c2 = arith.constant 2 : index
    %c0_15 = arith.constant 0 : index
    %c0_16 = arith.constant 0 : index
    %24 = vector.load %arg3[%c2, %c0_15, %c0_16] : memref<9x8x3xf32, #tpu.memory_space<vmem>>, vector<1x8x3xf32>
    %25 = vector.shape_cast %24 : vector<1x8x3xf32> to vector<8x3xf32>
    %cst_17 = arith.constant dense<0.000000e+00> : vector<8x290xf32>
    %26 = tpu.matmul %25, %23, %cst_17 {dimension_numbers = #tpu.dot_dimension_numbers<[1], [0], [0], [1], [0, 0, 1, 1], [], []>} : vector<8x3xf32>, vector<3x290xf32>, vector<8x290xf32> -> vector<8x290xf32>
    %27 = arith.addf %19, %26 : vector<8x290xf32>
    %28 = vector.extract_strided_slice %0 {offsets = [0, 16], sizes = [3, 290], strides = [1, 1]} : vector<3x324xf32> to vector<3x290xf32>
    %29 = vector.extract_strided_slice %2 {offsets = [0, 0], sizes = [1, 290], strides = [1, 1]} : vector<3x290xf32> to vector<1x290xf32>
    %30 = vector.broadcast %29 : vector<1x290xf32> to vector<3x290xf32>
    %31 = arith.mulf %28, %30 : vector<3x290xf32>
    %c3 = arith.constant 3 : index
    %c0_18 = arith.constant 0 : index
    %c0_19 = arith.constant 0 : index
    %32 = vector.load %arg3[%c3, %c0_18, %c0_19] : memref<9x8x3xf32, #tpu.memory_space<vmem>>, vector<1x8x3xf32>
    %33 = vector.shape_cast %32 : vector<1x8x3xf32> to vector<8x3xf32>
    %cst_20 = arith.constant dense<0.000000e+00> : vector<8x290xf32>
    %34 = tpu.matmul %33, %31, %cst_20 {dimension_numbers = #tpu.dot_dimension_numbers<[1], [0], [0], [1], [0, 0, 1, 1], [], []>} : vector<8x3xf32>, vector<3x290xf32>, vector<8x290xf32> -> vector<8x290xf32>
    %35 = arith.addf %27, %34 : vector<8x290xf32>
    %36 = vector.extract_strided_slice %0 {offsets = [0, 17], sizes = [3, 290], strides = [1, 1]} : vector<3x324xf32> to vector<3x290xf32>
    %37 = vector.extract_strided_slice %2 {offsets = [1, 0], sizes = [1, 290], strides = [1, 1]} : vector<3x290xf32> to vector<1x290xf32>
    %38 = vector.broadcast %37 : vector<1x290xf32> to vector<3x290xf32>
    %39 = arith.mulf %36, %38 : vector<3x290xf32>
    %c4 = arith.constant 4 : index
    %c0_21 = arith.constant 0 : index
    %c0_22 = arith.constant 0 : index
    %40 = vector.load %arg3[%c4, %c0_21, %c0_22] : memref<9x8x3xf32, #tpu.memory_space<vmem>>, vector<1x8x3xf32>
    %41 = vector.shape_cast %40 : vector<1x8x3xf32> to vector<8x3xf32>
    %cst_23 = arith.constant dense<0.000000e+00> : vector<8x290xf32>
    %42 = tpu.matmul %41, %39, %cst_23 {dimension_numbers = #tpu.dot_dimension_numbers<[1], [0], [0], [1], [0, 0, 1, 1], [], []>} : vector<8x3xf32>, vector<3x290xf32>, vector<8x290xf32> -> vector<8x290xf32>
    %43 = arith.addf %35, %42 : vector<8x290xf32>
    %44 = vector.extract_strided_slice %0 {offsets = [0, 18], sizes = [3, 290], strides = [1, 1]} : vector<3x324xf32> to vector<3x290xf32>
    %45 = vector.extract_strided_slice %2 {offsets = [2, 0], sizes = [1, 290], strides = [1, 1]} : vector<3x290xf32> to vector<1x290xf32>
    %46 = vector.broadcast %45 : vector<1x290xf32> to vector<3x290xf32>
    %47 = arith.mulf %44, %46 : vector<3x290xf32>
    %c5 = arith.constant 5 : index
    %c0_24 = arith.constant 0 : index
    %c0_25 = arith.constant 0 : index
    %48 = vector.load %arg3[%c5, %c0_24, %c0_25] : memref<9x8x3xf32, #tpu.memory_space<vmem>>, vector<1x8x3xf32>
    %49 = vector.shape_cast %48 : vector<1x8x3xf32> to vector<8x3xf32>
    %cst_26 = arith.constant dense<0.000000e+00> : vector<8x290xf32>
    %50 = tpu.matmul %49, %47, %cst_26 {dimension_numbers = #tpu.dot_dimension_numbers<[1], [0], [0], [1], [0, 0, 1, 1], [], []>} : vector<8x3xf32>, vector<3x290xf32>, vector<8x290xf32> -> vector<8x290xf32>
    %51 = arith.addf %43, %50 : vector<8x290xf32>
    %52 = vector.extract_strided_slice %0 {offsets = [0, 32], sizes = [3, 290], strides = [1, 1]} : vector<3x324xf32> to vector<3x290xf32>
    %53 = vector.extract_strided_slice %2 {offsets = [0, 0], sizes = [1, 290], strides = [1, 1]} : vector<3x290xf32> to vector<1x290xf32>
    %54 = vector.broadcast %53 : vector<1x290xf32> to vector<3x290xf32>
    %55 = arith.mulf %52, %54 : vector<3x290xf32>
    %c6 = arith.constant 6 : index
    %c0_27 = arith.constant 0 : index
    %c0_28 = arith.constant 0 : index
    %56 = vector.load %arg3[%c6, %c0_27, %c0_28] : memref<9x8x3xf32, #tpu.memory_space<vmem>>, vector<1x8x3xf32>
    %57 = vector.shape_cast %56 : vector<1x8x3xf32> to vector<8x3xf32>
    %cst_29 = arith.constant dense<0.000000e+00> : vector<8x290xf32>
    %58 = tpu.matmul %57, %55, %cst_29 {dimension_numbers = #tpu.dot_dimension_numbers<[1], [0], [0], [1], [0, 0, 1, 1], [], []>} : vector<8x3xf32>, vector<3x290xf32>, vector<8x290xf32> -> vector<8x290xf32>
    %59 = arith.addf %51, %58 : vector<8x290xf32>
    %60 = vector.extract_strided_slice %0 {offsets = [0, 33], sizes = [3, 290], strides = [1, 1]} : vector<3x324xf32> to vector<3x290xf32>
    %61 = vector.extract_strided_slice %2 {offsets = [1, 0], sizes = [1, 290], strides = [1, 1]} : vector<3x290xf32> to vector<1x290xf32>
    %62 = vector.broadcast %61 : vector<1x290xf32> to vector<3x290xf32>
    %63 = arith.mulf %60, %62 : vector<3x290xf32>
    %c7 = arith.constant 7 : index
    %c0_30 = arith.constant 0 : index
    %c0_31 = arith.constant 0 : index
    %64 = vector.load %arg3[%c7, %c0_30, %c0_31] : memref<9x8x3xf32, #tpu.memory_space<vmem>>, vector<1x8x3xf32>
    %65 = vector.shape_cast %64 : vector<1x8x3xf32> to vector<8x3xf32>
    %cst_32 = arith.constant dense<0.000000e+00> : vector<8x290xf32>
    %66 = tpu.matmul %65, %63, %cst_32 {dimension_numbers = #tpu.dot_dimension_numbers<[1], [0], [0], [1], [0, 0, 1, 1], [], []>} : vector<8x3xf32>, vector<3x290xf32>, vector<8x290xf32> -> vector<8x290xf32>
    %67 = arith.addf %59, %66 : vector<8x290xf32>
    %68 = vector.extract_strided_slice %0 {offsets = [0, 34], sizes = [3, 290], strides = [1, 1]} : vector<3x324xf32> to vector<3x290xf32>
    %69 = vector.extract_strided_slice %2 {offsets = [2, 0], sizes = [1, 290], strides = [1, 1]} : vector<3x290xf32> to vector<1x290xf32>
    %70 = vector.broadcast %69 : vector<1x290xf32> to vector<3x290xf32>
    %71 = arith.mulf %68, %70 : vector<3x290xf32>
    %c8 = arith.constant 8 : index
    %c0_33 = arith.constant 0 : index
    %c0_34 = arith.constant 0 : index
    %72 = vector.load %arg3[%c8, %c0_33, %c0_34] : memref<9x8x3xf32, #tpu.memory_space<vmem>>, vector<1x8x3xf32>
    %73 = vector.shape_cast %72 : vector<1x8x3xf32> to vector<8x3xf32>
    %cst_35 = arith.constant dense<0.000000e+00> : vector<8x290xf32>
    %74 = tpu.matmul %73, %71, %cst_35 {dimension_numbers = #tpu.dot_dimension_numbers<[1], [0], [0], [1], [0, 0, 1, 1], [], []>} : vector<8x3xf32>, vector<3x290xf32>, vector<8x290xf32> -> vector<8x290xf32>
    %75 = arith.addf %67, %74 : vector<8x290xf32>
    %c0_36 = arith.constant 0 : index
    %c0_37 = arith.constant 0 : index
    %76 = vector.load %arg4[%c0_36, %c0_37] : memref<8x1xf32, #tpu.memory_space<vmem>>, vector<8x1xf32>
    %77 = vector.broadcast %76 : vector<8x1xf32> to vector<8x290xf32>
    %78 = arith.addf %75, %77 : vector<8x290xf32>
    %79 = vector.broadcast %4 : vector<1x290xf32> to vector<8x290xf32>
    %80 = arith.mulf %78, %79 : vector<8x290xf32>
    %cst_38 = arith.constant 0.000000e+00 : f32
    %81 = vector.broadcast %cst_38 : f32 to vector<8x290xf32>
    %82 = arith.maximumf %80, %81 : vector<8x290xf32>
    %83 = vector.extract_strided_slice %1 {offsets = [0, 0], sizes = [1, 290], strides = [1, 1]} : vector<1x324xf32> to vector<1x290xf32>
    %84 = vector.extract_strided_slice %2 {offsets = [0, 0], sizes = [1, 290], strides = [1, 1]} : vector<3x290xf32> to vector<1x290xf32>
    %85 = arith.mulf %83, %84 : vector<1x290xf32>
    %c0_39 = arith.constant 0 : index
    %c0_40 = arith.constant 0 : index
    %c0_41 = arith.constant 0 : index
    %86 = vector.load %arg5[%c0_39, %c0_40, %c0_41] : memref<9x8x1xf32, #tpu.memory_space<vmem>>, vector<1x8x1xf32>
    %87 = vector.shape_cast %86 : vector<1x8x1xf32> to vector<8x1xf32>
    %cst_42 = arith.constant dense<0.000000e+00> : vector<8x290xf32>
    %88 = tpu.matmul %87, %85, %cst_42 {dimension_numbers = #tpu.dot_dimension_numbers<[1], [0], [0], [1], [0, 0, 1, 1], [], []>} : vector<8x1xf32>, vector<1x290xf32>, vector<8x290xf32> -> vector<8x290xf32>
    %89 = vector.extract_strided_slice %1 {offsets = [0, 1], sizes = [1, 290], strides = [1, 1]} : vector<1x324xf32> to vector<1x290xf32>
    %90 = vector.extract_strided_slice %2 {offsets = [1, 0], sizes = [1, 290], strides = [1, 1]} : vector<3x290xf32> to vector<1x290xf32>
    %91 = arith.mulf %89, %90 : vector<1x290xf32>
    %c1_43 = arith.constant 1 : index
    %c0_44 = arith.constant 0 : index
    %c0_45 = arith.constant 0 : index
    %92 = vector.load %arg5[%c1_43, %c0_44, %c0_45] : memref<9x8x1xf32, #tpu.memory_space<vmem>>, vector<1x8x1xf32>
    %93 = vector.shape_cast %92 : vector<1x8x1xf32> to vector<8x1xf32>
    %cst_46 = arith.constant dense<0.000000e+00> : vector<8x290xf32>
    %94 = tpu.matmul %93, %91, %cst_46 {dimension_numbers = #tpu.dot_dimension_numbers<[1], [0], [0], [1], [0, 0, 1, 1], [], []>} : vector<8x1xf32>, vector<1x290xf32>, vector<8x290xf32> -> vector<8x290xf32>
    %95 = arith.addf %88, %94 : vector<8x290xf32>
    %96 = vector.extract_strided_slice %1 {offsets = [0, 2], sizes = [1, 290], strides = [1, 1]} : vector<1x324xf32> to vector<1x290xf32>
    %97 = vector.extract_strided_slice %2 {offsets = [2, 0], sizes = [1, 290], strides = [1, 1]} : vector<3x290xf32> to vector<1x290xf32>
    %98 = arith.mulf %96, %97 : vector<1x290xf32>
    %c2_47 = arith.constant 2 : index
    %c0_48 = arith.constant 0 : index
    %c0_49 = arith.constant 0 : index
    %99 = vector.load %arg5[%c2_47, %c0_48, %c0_49] : memref<9x8x1xf32, #tpu.memory_space<vmem>>, vector<1x8x1xf32>
    %100 = vector.shape_cast %99 : vector<1x8x1xf32> to vector<8x1xf32>
    %cst_50 = arith.constant dense<0.000000e+00> : vector<8x290xf32>
    %101 = tpu.matmul %100, %98, %cst_50 {dimension_numbers = #tpu.dot_dimension_numbers<[1], [0], [0], [1], [0, 0, 1, 1], [], []>} : vector<8x1xf32>, vector<1x290xf32>, vector<8x290xf32> -> vector<8x290xf32>
    %102 = arith.addf %95, %101 : vector<8x290xf32>
    %103 = vector.extract_strided_slice %1 {offsets = [0, 16], sizes = [1, 290], strides = [1, 1]} : vector<1x324xf32> to vector<1x290xf32>
    %104 = vector.extract_strided_slice %2 {offsets = [0, 0], sizes = [1, 290], strides = [1, 1]} : vector<3x290xf32> to vector<1x290xf32>
    %105 = arith.mulf %103, %104 : vector<1x290xf32>
    %c3_51 = arith.constant 3 : index
    %c0_52 = arith.constant 0 : index
    %c0_53 = arith.constant 0 : index
    %106 = vector.load %arg5[%c3_51, %c0_52, %c0_53] : memref<9x8x1xf32, #tpu.memory_space<vmem>>, vector<1x8x1xf32>
    %107 = vector.shape_cast %106 : vector<1x8x1xf32> to vector<8x1xf32>
    %cst_54 = arith.constant dense<0.000000e+00> : vector<8x290xf32>
    %108 = tpu.matmul %107, %105, %cst_54 {dimension_numbers = #tpu.dot_dimension_numbers<[1], [0], [0], [1], [0, 0, 1, 1], [], []>} : vector<8x1xf32>, vector<1x290xf32>, vector<8x290xf32> -> vector<8x290xf32>
    %109 = arith.addf %102, %108 : vector<8x290xf32>
    %110 = vector.extract_strided_slice %1 {offsets = [0, 17], sizes = [1, 290], strides = [1, 1]} : vector<1x324xf32> to vector<1x290xf32>
    %111 = vector.extract_strided_slice %2 {offsets = [1, 0], sizes = [1, 290], strides = [1, 1]} : vector<3x290xf32> to vector<1x290xf32>
    %112 = arith.mulf %110, %111 : vector<1x290xf32>
    %c4_55 = arith.constant 4 : index
    %c0_56 = arith.constant 0 : index
    %c0_57 = arith.constant 0 : index
    %113 = vector.load %arg5[%c4_55, %c0_56, %c0_57] : memref<9x8x1xf32, #tpu.memory_space<vmem>>, vector<1x8x1xf32>
    %114 = vector.shape_cast %113 : vector<1x8x1xf32> to vector<8x1xf32>
    %cst_58 = arith.constant dense<0.000000e+00> : vector<8x290xf32>
    %115 = tpu.matmul %114, %112, %cst_58 {dimension_numbers = #tpu.dot_dimension_numbers<[1], [0], [0], [1], [0, 0, 1, 1], [], []>} : vector<8x1xf32>, vector<1x290xf32>, vector<8x290xf32> -> vector<8x290xf32>
    %116 = arith.addf %109, %115 : vector<8x290xf32>
    %117 = vector.extract_strided_slice %1 {offsets = [0, 18], sizes = [1, 290], strides = [1, 1]} : vector<1x324xf32> to vector<1x290xf32>
    %118 = vector.extract_strided_slice %2 {offsets = [2, 0], sizes = [1, 290], strides = [1, 1]} : vector<3x290xf32> to vector<1x290xf32>
    %119 = arith.mulf %117, %118 : vector<1x290xf32>
    %c5_59 = arith.constant 5 : index
    %c0_60 = arith.constant 0 : index
    %c0_61 = arith.constant 0 : index
    %120 = vector.load %arg5[%c5_59, %c0_60, %c0_61] : memref<9x8x1xf32, #tpu.memory_space<vmem>>, vector<1x8x1xf32>
    %121 = vector.shape_cast %120 : vector<1x8x1xf32> to vector<8x1xf32>
    %cst_62 = arith.constant dense<0.000000e+00> : vector<8x290xf32>
    %122 = tpu.matmul %121, %119, %cst_62 {dimension_numbers = #tpu.dot_dimension_numbers<[1], [0], [0], [1], [0, 0, 1, 1], [], []>} : vector<8x1xf32>, vector<1x290xf32>, vector<8x290xf32> -> vector<8x290xf32>
    %123 = arith.addf %116, %122 : vector<8x290xf32>
    %124 = vector.extract_strided_slice %1 {offsets = [0, 32], sizes = [1, 290], strides = [1, 1]} : vector<1x324xf32> to vector<1x290xf32>
    %125 = vector.extract_strided_slice %2 {offsets = [0, 0], sizes = [1, 290], strides = [1, 1]} : vector<3x290xf32> to vector<1x290xf32>
    %126 = arith.mulf %124, %125 : vector<1x290xf32>
    %c6_63 = arith.constant 6 : index
    %c0_64 = arith.constant 0 : index
    %c0_65 = arith.constant 0 : index
    %127 = vector.load %arg5[%c6_63, %c0_64, %c0_65] : memref<9x8x1xf32, #tpu.memory_space<vmem>>, vector<1x8x1xf32>
    %128 = vector.shape_cast %127 : vector<1x8x1xf32> to vector<8x1xf32>
    %cst_66 = arith.constant dense<0.000000e+00> : vector<8x290xf32>
    %129 = tpu.matmul %128, %126, %cst_66 {dimension_numbers = #tpu.dot_dimension_numbers<[1], [0], [0], [1], [0, 0, 1, 1], [], []>} : vector<8x1xf32>, vector<1x290xf32>, vector<8x290xf32> -> vector<8x290xf32>
    %130 = arith.addf %123, %129 : vector<8x290xf32>
    %131 = vector.extract_strided_slice %1 {offsets = [0, 33], sizes = [1, 290], strides = [1, 1]} : vector<1x324xf32> to vector<1x290xf32>
    %132 = vector.extract_strided_slice %2 {offsets = [1, 0], sizes = [1, 290], strides = [1, 1]} : vector<3x290xf32> to vector<1x290xf32>
    %133 = arith.mulf %131, %132 : vector<1x290xf32>
    %c7_67 = arith.constant 7 : index
    %c0_68 = arith.constant 0 : index
    %c0_69 = arith.constant 0 : index
    %134 = vector.load %arg5[%c7_67, %c0_68, %c0_69] : memref<9x8x1xf32, #tpu.memory_space<vmem>>, vector<1x8x1xf32>
    %135 = vector.shape_cast %134 : vector<1x8x1xf32> to vector<8x1xf32>
    %cst_70 = arith.constant dense<0.000000e+00> : vector<8x290xf32>
    %136 = tpu.matmul %135, %133, %cst_70 {dimension_numbers = #tpu.dot_dimension_numbers<[1], [0], [0], [1], [0, 0, 1, 1], [], []>} : vector<8x1xf32>, vector<1x290xf32>, vector<8x290xf32> -> vector<8x290xf32>
    %137 = arith.addf %130, %136 : vector<8x290xf32>
    %138 = vector.extract_strided_slice %1 {offsets = [0, 34], sizes = [1, 290], strides = [1, 1]} : vector<1x324xf32> to vector<1x290xf32>
    %139 = vector.extract_strided_slice %2 {offsets = [2, 0], sizes = [1, 290], strides = [1, 1]} : vector<3x290xf32> to vector<1x290xf32>
    %140 = arith.mulf %138, %139 : vector<1x290xf32>
    %c8_71 = arith.constant 8 : index
    %c0_72 = arith.constant 0 : index
    %c0_73 = arith.constant 0 : index
    %141 = vector.load %arg5[%c8_71, %c0_72, %c0_73] : memref<9x8x1xf32, #tpu.memory_space<vmem>>, vector<1x8x1xf32>
    %142 = vector.shape_cast %141 : vector<1x8x1xf32> to vector<8x1xf32>
    %cst_74 = arith.constant dense<0.000000e+00> : vector<8x290xf32>
    %143 = tpu.matmul %142, %140, %cst_74 {dimension_numbers = #tpu.dot_dimension_numbers<[1], [0], [0], [1], [0, 0, 1, 1], [], []>} : vector<8x1xf32>, vector<1x290xf32>, vector<8x290xf32> -> vector<8x290xf32>
    %144 = arith.addf %137, %143 : vector<8x290xf32>
    %c0_75 = arith.constant 0 : index
    %c0_76 = arith.constant 0 : index
    %145 = vector.load %arg6[%c0_75, %c0_76] : memref<8x1xf32, #tpu.memory_space<vmem>>, vector<8x1xf32>
    %146 = vector.broadcast %145 : vector<8x1xf32> to vector<8x290xf32>
    %147 = arith.addf %144, %146 : vector<8x290xf32>
    %148 = vector.broadcast %4 : vector<1x290xf32> to vector<8x290xf32>
    %149 = arith.mulf %147, %148 : vector<8x290xf32>
    %cst_77 = arith.constant 0.000000e+00 : f32
    %150 = vector.broadcast %cst_77 : f32 to vector<8x290xf32>
    %151 = arith.maximumf %149, %150 : vector<8x290xf32>
    %152 = tpu.concatenate %82, %151 in 0 : vector<8x290xf32>, vector<8x290xf32> -> vector<16x290xf32>
    %153 = vector.extract_strided_slice %152 {offsets = [0, 0], sizes = [16, 256], strides = [1, 1]} : vector<16x290xf32> to vector<16x256xf32>
    %154 = vector.extract_strided_slice %3 {offsets = [0, 0], sizes = [1, 256], strides = [1, 1]} : vector<3x256xf32> to vector<1x256xf32>
    %155 = vector.broadcast %154 : vector<1x256xf32> to vector<16x256xf32>
    %156 = arith.mulf %153, %155 : vector<16x256xf32>
    %c0_78 = arith.constant 0 : index
    %c0_79 = arith.constant 0 : index
    %c0_80 = arith.constant 0 : index
    %157 = vector.load %arg7[%c0_78, %c0_79, %c0_80] : memref<9x1x16xf32, #tpu.memory_space<vmem>>, vector<1x1x16xf32>
    %158 = vector.shape_cast %157 : vector<1x1x16xf32> to vector<1x16xf32>
    %cst_81 = arith.constant dense<0.000000e+00> : vector<1x256xf32>
    %159 = tpu.matmul %158, %156, %cst_81 {dimension_numbers = #tpu.dot_dimension_numbers<[1], [0], [0], [1], [0, 0, 1, 1], [], []>} : vector<1x16xf32>, vector<16x256xf32>, vector<1x256xf32> -> vector<1x256xf32>
    %160 = vector.extract_strided_slice %152 {offsets = [0, 1], sizes = [16, 256], strides = [1, 1]} : vector<16x290xf32> to vector<16x256xf32>
    %161 = vector.extract_strided_slice %3 {offsets = [1, 0], sizes = [1, 256], strides = [1, 1]} : vector<3x256xf32> to vector<1x256xf32>
    %162 = vector.broadcast %161 : vector<1x256xf32> to vector<16x256xf32>
    %163 = arith.mulf %160, %162 : vector<16x256xf32>
    %c1_82 = arith.constant 1 : index
    %c0_83 = arith.constant 0 : index
    %c0_84 = arith.constant 0 : index
    %164 = vector.load %arg7[%c1_82, %c0_83, %c0_84] : memref<9x1x16xf32, #tpu.memory_space<vmem>>, vector<1x1x16xf32>
    %165 = vector.shape_cast %164 : vector<1x1x16xf32> to vector<1x16xf32>
    %cst_85 = arith.constant dense<0.000000e+00> : vector<1x256xf32>
    %166 = tpu.matmul %165, %163, %cst_85 {dimension_numbers = #tpu.dot_dimension_numbers<[1], [0], [0], [1], [0, 0, 1, 1], [], []>} : vector<1x16xf32>, vector<16x256xf32>, vector<1x256xf32> -> vector<1x256xf32>
    %167 = arith.addf %159, %166 : vector<1x256xf32>
    %168 = vector.extract_strided_slice %152 {offsets = [0, 2], sizes = [16, 256], strides = [1, 1]} : vector<16x290xf32> to vector<16x256xf32>
    %169 = vector.extract_strided_slice %3 {offsets = [2, 0], sizes = [1, 256], strides = [1, 1]} : vector<3x256xf32> to vector<1x256xf32>
    %170 = vector.broadcast %169 : vector<1x256xf32> to vector<16x256xf32>
    %171 = arith.mulf %168, %170 : vector<16x256xf32>
    %c2_86 = arith.constant 2 : index
    %c0_87 = arith.constant 0 : index
    %c0_88 = arith.constant 0 : index
    %172 = vector.load %arg7[%c2_86, %c0_87, %c0_88] : memref<9x1x16xf32, #tpu.memory_space<vmem>>, vector<1x1x16xf32>
    %173 = vector.shape_cast %172 : vector<1x1x16xf32> to vector<1x16xf32>
    %cst_89 = arith.constant dense<0.000000e+00> : vector<1x256xf32>
    %174 = tpu.matmul %173, %171, %cst_89 {dimension_numbers = #tpu.dot_dimension_numbers<[1], [0], [0], [1], [0, 0, 1, 1], [], []>} : vector<1x16xf32>, vector<16x256xf32>, vector<1x256xf32> -> vector<1x256xf32>
    %175 = arith.addf %167, %174 : vector<1x256xf32>
    %176 = vector.extract_strided_slice %152 {offsets = [0, 16], sizes = [16, 256], strides = [1, 1]} : vector<16x290xf32> to vector<16x256xf32>
    %177 = vector.extract_strided_slice %3 {offsets = [0, 0], sizes = [1, 256], strides = [1, 1]} : vector<3x256xf32> to vector<1x256xf32>
    %178 = vector.broadcast %177 : vector<1x256xf32> to vector<16x256xf32>
    %179 = arith.mulf %176, %178 : vector<16x256xf32>
    %c3_90 = arith.constant 3 : index
    %c0_91 = arith.constant 0 : index
    %c0_92 = arith.constant 0 : index
    %180 = vector.load %arg7[%c3_90, %c0_91, %c0_92] : memref<9x1x16xf32, #tpu.memory_space<vmem>>, vector<1x1x16xf32>
    %181 = vector.shape_cast %180 : vector<1x1x16xf32> to vector<1x16xf32>
    %cst_93 = arith.constant dense<0.000000e+00> : vector<1x256xf32>
    %182 = tpu.matmul %181, %179, %cst_93 {dimension_numbers = #tpu.dot_dimension_numbers<[1], [0], [0], [1], [0, 0, 1, 1], [], []>} : vector<1x16xf32>, vector<16x256xf32>, vector<1x256xf32> -> vector<1x256xf32>
    %183 = arith.addf %175, %182 : vector<1x256xf32>
    %184 = vector.extract_strided_slice %152 {offsets = [0, 17], sizes = [16, 256], strides = [1, 1]} : vector<16x290xf32> to vector<16x256xf32>
    %185 = vector.extract_strided_slice %3 {offsets = [1, 0], sizes = [1, 256], strides = [1, 1]} : vector<3x256xf32> to vector<1x256xf32>
    %186 = vector.broadcast %185 : vector<1x256xf32> to vector<16x256xf32>
    %187 = arith.mulf %184, %186 : vector<16x256xf32>
    %c4_94 = arith.constant 4 : index
    %c0_95 = arith.constant 0 : index
    %c0_96 = arith.constant 0 : index
    %188 = vector.load %arg7[%c4_94, %c0_95, %c0_96] : memref<9x1x16xf32, #tpu.memory_space<vmem>>, vector<1x1x16xf32>
    %189 = vector.shape_cast %188 : vector<1x1x16xf32> to vector<1x16xf32>
    %cst_97 = arith.constant dense<0.000000e+00> : vector<1x256xf32>
    %190 = tpu.matmul %189, %187, %cst_97 {dimension_numbers = #tpu.dot_dimension_numbers<[1], [0], [0], [1], [0, 0, 1, 1], [], []>} : vector<1x16xf32>, vector<16x256xf32>, vector<1x256xf32> -> vector<1x256xf32>
    %191 = arith.addf %183, %190 : vector<1x256xf32>
    %192 = vector.extract_strided_slice %152 {offsets = [0, 18], sizes = [16, 256], strides = [1, 1]} : vector<16x290xf32> to vector<16x256xf32>
    %193 = vector.extract_strided_slice %3 {offsets = [2, 0], sizes = [1, 256], strides = [1, 1]} : vector<3x256xf32> to vector<1x256xf32>
    %194 = vector.broadcast %193 : vector<1x256xf32> to vector<16x256xf32>
    %195 = arith.mulf %192, %194 : vector<16x256xf32>
    %c5_98 = arith.constant 5 : index
    %c0_99 = arith.constant 0 : index
    %c0_100 = arith.constant 0 : index
    %196 = vector.load %arg7[%c5_98, %c0_99, %c0_100] : memref<9x1x16xf32, #tpu.memory_space<vmem>>, vector<1x1x16xf32>
    %197 = vector.shape_cast %196 : vector<1x1x16xf32> to vector<1x16xf32>
    %cst_101 = arith.constant dense<0.000000e+00> : vector<1x256xf32>
    %198 = tpu.matmul %197, %195, %cst_101 {dimension_numbers = #tpu.dot_dimension_numbers<[1], [0], [0], [1], [0, 0, 1, 1], [], []>} : vector<1x16xf32>, vector<16x256xf32>, vector<1x256xf32> -> vector<1x256xf32>
    %199 = arith.addf %191, %198 : vector<1x256xf32>
    %200 = vector.extract_strided_slice %152 {offsets = [0, 32], sizes = [16, 256], strides = [1, 1]} : vector<16x290xf32> to vector<16x256xf32>
    %201 = vector.extract_strided_slice %3 {offsets = [0, 0], sizes = [1, 256], strides = [1, 1]} : vector<3x256xf32> to vector<1x256xf32>
    %202 = vector.broadcast %201 : vector<1x256xf32> to vector<16x256xf32>
    %203 = arith.mulf %200, %202 : vector<16x256xf32>
    %c6_102 = arith.constant 6 : index
    %c0_103 = arith.constant 0 : index
    %c0_104 = arith.constant 0 : index
    %204 = vector.load %arg7[%c6_102, %c0_103, %c0_104] : memref<9x1x16xf32, #tpu.memory_space<vmem>>, vector<1x1x16xf32>
    %205 = vector.shape_cast %204 : vector<1x1x16xf32> to vector<1x16xf32>
    %cst_105 = arith.constant dense<0.000000e+00> : vector<1x256xf32>
    %206 = tpu.matmul %205, %203, %cst_105 {dimension_numbers = #tpu.dot_dimension_numbers<[1], [0], [0], [1], [0, 0, 1, 1], [], []>} : vector<1x16xf32>, vector<16x256xf32>, vector<1x256xf32> -> vector<1x256xf32>
    %207 = arith.addf %199, %206 : vector<1x256xf32>
    %208 = vector.extract_strided_slice %152 {offsets = [0, 33], sizes = [16, 256], strides = [1, 1]} : vector<16x290xf32> to vector<16x256xf32>
    %209 = vector.extract_strided_slice %3 {offsets = [1, 0], sizes = [1, 256], strides = [1, 1]} : vector<3x256xf32> to vector<1x256xf32>
    %210 = vector.broadcast %209 : vector<1x256xf32> to vector<16x256xf32>
    %211 = arith.mulf %208, %210 : vector<16x256xf32>
    %c7_106 = arith.constant 7 : index
    %c0_107 = arith.constant 0 : index
    %c0_108 = arith.constant 0 : index
    %212 = vector.load %arg7[%c7_106, %c0_107, %c0_108] : memref<9x1x16xf32, #tpu.memory_space<vmem>>, vector<1x1x16xf32>
    %213 = vector.shape_cast %212 : vector<1x1x16xf32> to vector<1x16xf32>
    %cst_109 = arith.constant dense<0.000000e+00> : vector<1x256xf32>
    %214 = tpu.matmul %213, %211, %cst_109 {dimension_numbers = #tpu.dot_dimension_numbers<[1], [0], [0], [1], [0, 0, 1, 1], [], []>} : vector<1x16xf32>, vector<16x256xf32>, vector<1x256xf32> -> vector<1x256xf32>
    %215 = arith.addf %207, %214 : vector<1x256xf32>
    %216 = vector.extract_strided_slice %152 {offsets = [0, 34], sizes = [16, 256], strides = [1, 1]} : vector<16x290xf32> to vector<16x256xf32>
    %217 = vector.extract_strided_slice %3 {offsets = [2, 0], sizes = [1, 256], strides = [1, 1]} : vector<3x256xf32> to vector<1x256xf32>
    %218 = vector.broadcast %217 : vector<1x256xf32> to vector<16x256xf32>
    %219 = arith.mulf %216, %218 : vector<16x256xf32>
    %c8_110 = arith.constant 8 : index
    %c0_111 = arith.constant 0 : index
    %c0_112 = arith.constant 0 : index
    %220 = vector.load %arg7[%c8_110, %c0_111, %c0_112] : memref<9x1x16xf32, #tpu.memory_space<vmem>>, vector<1x1x16xf32>
    %221 = vector.shape_cast %220 : vector<1x1x16xf32> to vector<1x16xf32>
    %cst_113 = arith.constant dense<0.000000e+00> : vector<1x256xf32>
    %222 = tpu.matmul %221, %219, %cst_113 {dimension_numbers = #tpu.dot_dimension_numbers<[1], [0], [0], [1], [0, 0, 1, 1], [], []>} : vector<1x16xf32>, vector<16x256xf32>, vector<1x256xf32> -> vector<1x256xf32>
    %223 = arith.addf %215, %222 : vector<1x256xf32>
    %c0_114 = arith.constant 0 : index
    %c0_115 = arith.constant 0 : index
    %224 = vector.load %arg8[%c0_114, %c0_115] : memref<1x1xf32, #tpu.memory_space<vmem>>, vector<1x1xf32>
    %225 = vector.broadcast %224 : vector<1x1xf32> to vector<1x256xf32>
    %226 = arith.addf %223, %225 : vector<1x256xf32>
    %c0_116 = arith.constant 0 : index
    %c0_117 = arith.constant 0 : index
    %227 = vector.load %arg12[%c0_116, %c0_117] : memref<1x256xf32, #tpu.memory_space<vmem>>, vector<1x256xf32>
    tpu.vector_store %arg12[%c0_116, %c0_117], %226 {strides = array<i32>} : memref<1x256xf32, #tpu.memory_space<vmem>>, vector<1x256xf32>,
    return
  }
  func.func @transform_0(%arg0: i32) -> (i32, i32) {
    %c0_i32 = arith.constant 0 : i32
    %c0_i32_0 = arith.constant 0 : i32
    %c0_i32_1 = arith.constant 0 : i32
    return %c0_i32, %c0_i32_0 : i32, i32
  }
  func.func @transform_1(%arg0: i32) -> (i32, i32) {
    %c0_i32 = arith.constant 0 : i32
    %c0_i32_0 = arith.constant 0 : i32
    %c0_i32_1 = arith.constant 0 : i32
    return %c0_i32, %c0_i32_0 : i32, i32
  }
  func.func @transform_2(%arg0: i32) -> (i32, i32, i32) {
    %c0_i32 = arith.constant 0 : i32
    %c0_i32_0 = arith.constant 0 : i32
    %c0_i32_1 = arith.constant 0 : i32
    %c0_i32_2 = arith.constant 0 : i32
    return %c0_i32, %c0_i32_0, %c0_i32_1 : i32, i32, i32
  }
  func.func @transform_3(%arg0: i32) -> (i32, i32) {
    %c0_i32 = arith.constant 0 : i32
    %c0_i32_0 = arith.constant 0 : i32
    %c0_i32_1 = arith.constant 0 : i32
    return %c0_i32, %c0_i32_0 : i32, i32
  }
  func.func @transform_4(%arg0: i32) -> (i32, i32, i32) {
    %c0_i32 = arith.constant 0 : i32
    %c0_i32_0 = arith.constant 0 : i32
    %c0_i32_1 = arith.constant 0 : i32
    %c0_i32_2 = arith.constant 0 : i32
    return %c0_i32, %c0_i32_0, %c0_i32_1 : i32, i32, i32
  }
  func.func @transform_5(%arg0: i32) -> (i32, i32) {
    %c0_i32 = arith.constant 0 : i32
    %c0_i32_0 = arith.constant 0 : i32
    %c0_i32_1 = arith.constant 0 : i32
    return %c0_i32, %c0_i32_0 : i32, i32
  }
  func.func @transform_6(%arg0: i32) -> (i32, i32, i32) {
    %c0_i32 = arith.constant 0 : i32
    %c0_i32_0 = arith.constant 0 : i32
    %c0_i32_1 = arith.constant 0 : i32
    %c0_i32_2 = arith.constant 0 : i32
    return %c0_i32, %c0_i32_0, %c0_i32_1 : i32, i32, i32
  }
  func.func @transform_7(%arg0: i32) -> (i32, i32) {
    %c0_i32 = arith.constant 0 : i32
    %c0_i32_0 = arith.constant 0 : i32
    %c0_i32_1 = arith.constant 0 : i32
    return %c0_i32, %c0_i32_0 : i32, i32
  }
  func.func @transform_8(%arg0: i32) -> (i32, i32) {
    %c0_i32 = arith.constant 0 : i32
    %c0_i32_0 = arith.constant 0 : i32
    %c0_i32_1 = arith.constant 0 : i32
    return %c0_i32, %c0_i32_0 : i32, i32
  }
  func.func @transform_9(%arg0: i32) -> (i32, i32) {
    %c0_i32 = arith.constant 0 : i32
    %c0_i32_0 = arith.constant 0 : i32
    %c0_i32_1 = arith.constant 0 : i32
    return %c0_i32, %c0_i32_0 : i32, i32
  }
  func.func @transform_10(%arg0: i32) -> (i32, i32) {
    %c0_i32 = arith.constant 0 : i32
    %c0_i32_0 = arith.constant 0 : i32
    %c0_i32_1 = arith.constant 0 : i32
    return %c0_i32, %c0_i32_0 : i32, i32
  }
  func.func @transform_11(%arg0: i32) -> (i32, i32) {
    %c0_i32 = arith.constant 0 : i32
    %c0_i32_0 = arith.constant 0 : i32
    %c0_i32_1 = arith.constant 0 : i32
    return %c0_i32, %c0_i32_0 : i32, i32
  }
}

</mosaic_0001>

<bundles_post_ra>
// kernel: tpu_custom_call.1
= control target key start
LH: loop header
LB: loop body
LE: loop exit
PB: predicated region body
PF: predicated region fallthrough
CT: control target
= control target key end

     0   :  { %s3836_s0 = inlined_call_operand.vmem [shape: f32[3,324], index: 0, kind: input, shape index: {}]   ;;  %s3837_s1 = inlined_call_operand.vmem [shape: f32[1,324], index: 1, kind: input, shape index: {}]   ;;  %s3838_s2 = inlined_call_operand.vmem [shape: f32[9,8,3], index: 2, kind: input, shape index: {}]   ;;  %s3839_s3 = inlined_call_operand.vmem [shape: f32[8,1], index: 3, kind: input, shape index: {}]   ;;  %s3840_s4 = inlined_call_operand.vmem [shape: f32[9,8,1], index: 4, kind: input, shape index: {}]   ;;  %s3841_s5 = inlined_call_operand.vmem [shape: f32[8,1], index: 5, kind: input, shape index: {}]   ;;  %s3842_s6 = inlined_call_operand.vmem [shape: f32[9,1,16], index: 6, kind: input, shape index: {}]   ;;  %s3843_s7 = inlined_call_operand.<no memory space> [shape: f32[1,1], index: 7, kind: input, shape index: {}]   ;;  %s3844_s8 = inlined_call_operand.vmem [shape: f32[3,290], index: 8, kind: input, shape index: {}]   ;;  %s3845_s9 = inlined_call_operand.vmem [shape: f32[3,256], index: 9, kind: input, shape index: {}]   ;;  %s3846_s10 = inlined_call_operand.vmem [shape: f32[1,290], index: 10, kind: input, shape index: {}]   ;;  %s3847_s11 = inlined_call_operand.hbm [shape: f32[1,256], index: 11, kind: output, shape index: {}]  }
   0x1   :  { %v16_v0 = vstv %s3843_s7 }
   0x2   :  { %17 = vst [vmem:[#allocation2] sm:$0x1] %v16_v0 }
   0x3   :  { %v3078_v1 = vld [vmem:[%s3844_s8] sm:$0x77]  ;;  %v3083_v2 = vld [vmem:[%s3844_s8 + $0x8] sm:$0x7]  ;;  %vm62_vm0 = vcmask 1043456   ;;  %s2994_s7 = smov 1  }
   0x4   :  { %v68_v3 = vperm.slane %v3078_v1, 1  ;;  %v69_v4 = vperm.slane %v3078_v1, 5  ;;  %v70_v5 = vperm.slane %v3083_v2, 1  ;;  %v262_v6 = vperm.slane %v3078_v1, 6 }
   0x5   :  { %v50_v7 = vperm.slane %v3078_v1, 0  ;;  %v51_v8 = vperm.slane %v3078_v1, 4  ;;  %v261_v14 = vperm.slane %v3078_v1, 2 }
   0x6   :  { %v74_v9 = vperm.slane %v68_v3, 1  ;;  %v75_v10 = vperm.slane %v69_v4, 1  ;;  %v76_v11 = vperm.slane %v70_v5, 1  ;;  %v268_v15 = vperm.slane %v262_v6, 2 }
   0x7   :  { %v57_v12 = vperm.slane %v51_v8, 0 }
   0x8   :  { %v80_v13 = vrot.slane %v75_v10, 4  ;;  %84 = vrot.lane.b32.xlu1 %v76_v11, %s2994_s7 }
   0x9   :  { %18 = vsyncpa [#allocation4], 0  ;;  %v56_v16 = vperm.slane %v50_v7, 0  ;;  %v61_v17 = vrot.slane %v57_v12, 4  ;;  %s2995_s8 = smov 17   ;;  %v263_v19 = vperm.slane %v3083_v2, 2 }
   0xa   :  { %v81_v18 = vsel %vm62_vm0, %v74_v9, %v80_v13  ;;  %v267_v20 = vperm.slane %v261_v14, 2  ;;  %v273_v21 = vrot.slane %v268_v15, 4  ;;  %s2996_s23 = smov 16   ;;  %v52_v25 = vperm.slane %v3083_v2, 0  ;;  %s2997_s24 = smov 2  }
   0xb   :  { %82 = vrot.lane.b32.xlu0 %v81_v18, %s2994_s7  ;;  %482 = vrot.lane.b32.xlu2 %v81_v18, %s2995_s8  ;;  %v63_v22 = vsel %vm62_vm0, %v56_v16, %v61_v17  ;;  %v269_v23 = vperm.slane %v263_v19, 2  ;;  %s2998_s25 = smov 18   ;;  %s2999_s26 = smov 32   ;;  %v1019_v27 = vrot.slane %v3078_v1, 3  ;;  %v1020_v28 = vrot.slane %v3083_v2, 6 }
   0xc   :  { %v274_v24 = vsel %vm62_vm0, %v267_v20, %v273_v21  ;;  %v58_v26 = vperm.slane %v52_v25, 0  ;;  %s3000_s27 = smov 33   ;;  %s3001_s28 = smov 34   ;;  %v1021_v29 = vrot.slane %v3083_v2, 1  ;;  %vm1022_vm1 = vcmask 1040384  }
   0xd   :  { %vm1024_vm2 = vcmask 1042434   ;;  %v1023_v30 = vsel %vm1022_vm1, %v3078_v1, %v1019_v27  ;;  %vm1026_vm3 = vcmask 1041408   ;;  %vm87_vm4 = vcmask 7168   ;;  %v3125_v35 = vld [vmem:[%s3836_s0] sm:$0x77]  ;;  %s3003_s14 = smov 126  }
   0xe   :  { %v1025_v31 = vsel %vm1024_vm2, %v1020_v28, %v1021_v29  ;;  %v3130_v36 = vld [vmem:[%s3836_s0 + $0x8] sm:$0x7]  ;;  %v65_v43 = vmul.f32 %v63_v22, %v3125_v35  ;;  %vm3849_vm5 = vcmask 15360   ;;  %s3002_s0 = smov 127   ;;  %vm3848_vm6 = vcmask 130048   ;;  %s3004_s15 = smov 112  }
   0xf   :  { %v3118_v32 = vsel %vm1026_vm3, %v1023_v30, %v1025_v31  ;;  %v66_v44 = vmul.f32 %v58_v26, %v3130_v36  ;;  %vm487_vm7 = vcmask 138240   ;;  %vm590_vm8 = vcmask 146432   ;;  %s3005_s16 = smov 111   ;;  %s3006_s17 = smov 110  }
  0x10   :  { %379 = vrot.lane.b32.xlu1 %v63_v22, %s2996_s23  ;;  %vm693_vm9 = vcmask 261120   ;;  %vm796_vm10 = vcmask 269312   ;;  %vm899_vm11 = vcmask 277504   ;;  %s3007_s18 = smov 96   ;;  %s3008_s19 = smov 95   ;;  %vm117_vm12 = vcmask 1042432  }
  0x11   :  { %s3009_s20 = smov 94   ;;  %vm113_vm13 = vcmask 23552   ;;  %vm110_vm14 = vcmask 1039360   ;;  %vm303_vm15 = vcmask 1031168   ;;  %vm407_vm0 = vcmask 916480   ;;  %s2669_s12 = sshll.u32 %s3847_s11, 4  ;;  %s2670_s12 = int_to_ptr.hbm [resolvable:$true] %s2669_s12 }
  0x12   :  { %vm510_vm2 = vcmask 908288   ;;  %vm613_vm3 = vcmask 900096  }
  0x13   :  { %275 = vrot.lane.b32.xlu0 %v274_v24, %s2997_s24  ;;  %277 = vrot.lane.b32.xlu2 %v269_v23, %s2997_s24 }
  0x18   :  { %381 = vrot.lane.b32.xlu1 %v58_v26, %s2996_s23 }
  0x1b   :  { %585 = vrot.lane.b32.xlu0 %v274_v24, %s2998_s25  ;;  %688 = vrot.lane.b32.xlu2 %v63_v22, %s2999_s26 }
  0x20   :  { %791 = vrot.lane.b32.xlu1 %v81_v18, %s3000_s27 }
  0x23   :  { %484 = vrot.lane.b32.xlu0 %v76_v11, %s2995_s8  ;;  %587 = vrot.lane.b32.xlu2 %v269_v23, %s2998_s25 }
  0x28   :  { %690 = vrot.lane.b32.xlu1 %v58_v26, %s2999_s26 }
  0x2b   :  { %894 = vrot.lane.b32.xlu0 %v274_v24, %s3001_s28  ;;  %793 = vrot.lane.b32.xlu2 %v76_v11, %s3000_s27 }
  0x33   :  { %896 = vrot.lane.b32.xlu0 %v269_v23, %s3001_s28 }
  0x3b   :  { %1293 = vrot.lane.b32.xlu0 %v3118_v32, %s2996_s23 }
  0x65   :  { %v483_v40 = vpop.permute.xlu2 %482 }
  0x66   :  { %v486_v4 = vrot.slane %v483_v40, 4 }
  0x68   :  { %v488_v10 = vsel %vm487_vm7, %v486_v4, %v483_v40 }
  0x69   :  { %v492_v13 = vmul.f32 %v488_v10, %v3125_v35 }
  0x6d   :  { %v278_v50 = vpop.permute.xlu2 %277 }
  0x75   :  { %v689_v3 = vpop.permute.xlu2 %688 }
  0x76   :  { %v692_v24 = vrot.slane %v689_v3, 4 }
  0x78   :  { %v694_v30 = vsel %vm693_vm9, %v692_v24, %v689_v3 }
  0x7a   :  { %v85_v34 = vpop.permute.xlu1 %84 }
  0x7d   :  { %v83_v33 = vpop.permute.xlu0 %82  ;;  %v588_v18 = vpop.permute.xlu2 %587 }
  0x7e   :  { %v86_v37 = vrot.slane %v83_v33, 4 }
  0x80   :  { %v88_v38 = vsel %vm87_vm4, %v86_v37, %v83_v33  ;;  %v89_v39 = vsel %vm87_vm4, %v86_v37, %v85_v34  ;;  %v698_v34 = vmul.f32 %v694_v30, %v3125_v35 }
  0x81   :  { %v92_v41 = vmul.f32 %v88_v38, %v3125_v35  ;;  %v93_v42 = vmul.f32 %v89_v39, %v3130_v36 }
  0x82   :  { %v380_v46 = vpop.permute.xlu1 %379 }
  0x83   :  { %98 = vst [vmem:[#allocation1] ss:$2 sm:$0xff] %v92_v41  ;;  %v383_v56 = vrot.slane %v380_v46, 4 }
  0x84   :  { %100 = vst [vmem:[#allocation1 + $0x10] ss:$2 sm:$0xff] %v93_v42 }
  0x85   :  { %v276_v45 = vpop.permute.xlu0 %275  ;;  %v385_v63 = vsel %vm3848_vm6, %v383_v56, %v380_v46  ;;  %v794_v40 = vpop.permute.xlu2 %793 }
  0x86   :  { %v279_v47 = vrot.slane %v276_v45, 4  ;;  %v389_v5 = vmul.f32 %v385_v63, %v3125_v35 }
  0x88   :  { %v282_v52 = vsel %vm3849_vm5, %v279_v47, %v278_v50  ;;  %v281_v53 = vsel %vm3849_vm5, %v279_v47, %v276_v45 }
  0x89   :  { %v286_v54 = vmul.f32 %v282_v52, %v3130_v36  ;;  %v285_v55 = vmul.f32 %v281_v53, %v3125_v35 }
  0x8a   :  { %v101_v48 = vld.sshfl [vmem:[#allocation1] sm:$0xff pattern:$0x75316420]  ;;  %v102_v49 = vld.sshfl [vmem:[#allocation1 + $0x8] sm:$0xff pattern:$0x75316420]  ;;  %v382_v60 = vpop.permute.xlu1 %381 }
  0x8b   :  { %186 = vst [vmem:[#allocation1] ss:$2 sm:$0xff] %v65_v43  ;;  %v103_v51 = vld.sshfl [vmem:[#allocation1 + $0x10] sm:$0xff pattern:$0x75316420]  ;;  %106 = vrot.lane.b32.xlu2 %v102_v49, %s3002_s0  ;;  %104 = vrot.lane.b32.xlu1 %v101_v48, %s3002_s0  ;;  %v386_v62 = vsel %vm3848_vm6, %v383_v56, %v382_v60 }
  0x8c   :  { %188 = vst [vmem:[#allocation1 + $0x10] ss:$2 sm:$0xff] %v66_v44  ;;  %108 = vrot.lane.b32.xlu0 %v103_v51, %s3002_s0  ;;  %v390_v0 = vmul.f32 %v386_v62, %v3130_v36 }
  0x8d   :  { %v586_v59 = vpop.permute.xlu0 %585 }
  0x8e   :  { %v589_v14 = vrot.slane %v586_v59, 4 }
  0x90   :  { %v592_v20 = vsel %vm590_vm8, %v589_v14, %v588_v18  ;;  %v591_v21 = vsel %vm590_vm8, %v589_v14, %v586_v59 }
  0x91   :  { %v596_v22 = vmul.f32 %v592_v20, %v3130_v36  ;;  %v595_v23 = vmul.f32 %v591_v21, %v3125_v35 }
  0x92   :  { %v3145_v57 = vld.sshfl [vmem:[#allocation1] sm:$0xff pattern:$0x75316420]  ;;  %v3147_v58 = vld.sshfl [vmem:[#allocation1 + $0x8] sm:$0xff pattern:$0x75316420]  ;;  %v792_v12 = vpop.permute.xlu1 %791 }
  0x93   :  { %291 = vst [vmem:[#allocation1] ss:$2 sm:$0xff] %v285_v55  ;;  %v3149_v61 = vld.sshfl [vmem:[#allocation1 + $0x10] sm:$0xff pattern:$0x75316420]  ;;  %v795_v37 = vrot.slane %v792_v12, 4  ;;  %2685 = vmatpush.msk.msra.mxu3 %vm117_vm12, %v3145_v57 }
  0x94   :  { %293 = vst [vmem:[#allocation1 + $0x10] ss:$2 sm:$0xff] %v286_v54 }
  0x95   :  { %v485_v9 = vpop.permute.xlu0 %484  ;;  %v798_v42 = vsel %vm796_vm10, %v795_v37, %v794_v40  ;;  %v797_v43 = vsel %vm796_vm10, %v795_v37, %v792_v12  ;;  %v2712_v40 = vld [vmem:[%s3838_s2 + $0x28] sm:$0xff] }
  0x96   :  { %v489_v11 = vsel %vm487_vm7, %v486_v4, %v485_v9  ;;  %v802_v44 = vmul.f32 %v798_v42, %v3130_v36  ;;  %v801_v45 = vmul.f32 %v797_v43, %v3125_v35  ;;  %v3212_v4 = vld [vmem:[%s3837_s1] sm:$0x7] }
  0x97   :  { %v493_v15 = vmul.f32 %v489_v11, %v3130_v36 }
  0x9a   :  { %v295_v6 = vld.sshfl [vmem:[#allocation1 + $0x8] sm:$0xff pattern:$0x75316420]  ;;  %v294_v7 = vld.sshfl [vmem:[#allocation1] sm:$0xff pattern:$0x75316420]  ;;  %v691_v27 = vpop.permute.xlu1 %690 }
  0x9b   :  { %v296_v8 = vld.sshfl [vmem:[#allocation1 + $0x10] sm:$0xff pattern:$0x75316420]  ;;  %299 = vrot.lane.b32.xlu0 %v295_v6, %s3003_s14  ;;  %297 = vrot.lane.b32.xlu2 %v294_v7, %s3003_s14  ;;  %395 = vst [vmem:[#allocation1] ss:$2 sm:$0xff] %v389_v5  ;;  %v695_v29 = vsel %vm693_vm9, %v692_v24, %v691_v27 }
  0x9c   :  { %397 = vst [vmem:[#allocation1 + $0x10] ss:$2 sm:$0xff] %v390_v0  ;;  %301 = vrot.lane.b32.xlu1 %v296_v8, %s3003_s14  ;;  %v699_v31 = vmul.f32 %v695_v29, %v3130_v36 }
  0x9d   :  { %v895_v33 = vpop.permute.xlu0 %894 }
  0x9e   :  { %v898_v46 = vrot.slane %v895_v33, 4 }
  0xa0   :  { %v900_v52 = vsel %vm899_vm11, %v898_v46, %v895_v33  ;;  %v2705_v33 = vld [vmem:[%s3838_s2 + $0x20] sm:$0xff] }
  0xa1   :  { %v904_v54 = vmul.f32 %v900_v52, %v3125_v35 }
  0xa2   :  { %v399_v16 = vld.sshfl [vmem:[#allocation1 + $0x8] sm:$0xff pattern:$0x75316420]  ;;  %v398_v17 = vld.sshfl [vmem:[#allocation1] sm:$0xff pattern:$0x75316420] }
  0xa3   :  { %v400_v19 = vld.sshfl [vmem:[#allocation1 + $0x10] sm:$0xff pattern:$0x75316420]  ;;  %403 = vrot.lane.b32.xlu0 %v399_v16, %s3004_s15  ;;  %401 = vrot.lane.b32.xlu2 %v398_v17, %s3004_s15  ;;  %498 = vst [vmem:[#allocation1] ss:$2 sm:$0xff] %v492_v13  ;;  %v67_v13 = vld [vmem:[%s3838_s2] sm:$0xff] }
  0xa4   :  { %500 = vst [vmem:[#allocation1 + $0x10] ss:$2 sm:$0xff] %v493_v15  ;;  %405 = vrot.lane.b32.xlu1 %v400_v19, %s3004_s15  ;;  %2686 = vmatmul.msk.f32.vlgmr.msra.gmra.mxu3 %vm113_vm13, %v67_v13 }
  0xa5   :  { %v897_v49 = vpop.permute.xlu0 %896 }
  0xa6   :  { %v901_v51 = vsel %vm899_vm11, %v898_v46, %v897_v49 }
  0xa7   :  { %v905_v53 = vmul.f32 %v901_v51, %v3130_v36 }
  0xaa   :  { %v502_v25 = vld.sshfl [vmem:[#allocation1 + $0x8] sm:$0xff pattern:$0x75316420]  ;;  %v501_v26 = vld.sshfl [vmem:[#allocation1] sm:$0xff pattern:$0x75316420] }
  0xab   :  { %v503_v28 = vld.sshfl [vmem:[#allocation1 + $0x10] sm:$0xff pattern:$0x75316420]  ;;  %504 = vrot.lane.b32.xlu0 %v501_v26, %s3005_s16  ;;  %601 = vst [vmem:[#allocation1] ss:$2 sm:$0xff] %v595_v23 }
  0xac   :  { %603 = vst [vmem:[#allocation1 + $0x10] ss:$2 sm:$0xff] %v596_v22  ;;  %508 = vrot.lane.b32.xlu2 %v503_v28, %s3005_s16  ;;  %506 = vrot.lane.b32.xlu1 %v502_v25, %s3005_s16  ;;  %v2698_v25 = vld [vmem:[%s3838_s2 + $0x18] sm:$0xff] }
  0xad   :  { %v1294_v0 = vpop.permute.xlu0 %1293 }
  0xae   :  { %v1295_v3 = vrot.slane %v1294_v0, 7 }
  0xb0   :  { %v1296_v57 = vsel %vm3848_vm6, %v1295_v3, %v1294_v0  ;;  %vm3850_vm6 = vcmask 785408  }
  0xb1   :  { %v1298_v7 = vmul.f32 %v1296_v57, %v3212_v4 }
  0xb2   :  { %v605_v38 = vld.sshfl [vmem:[#allocation1 + $0x8] sm:$0xff pattern:$0x75316420]  ;;  %v604_v39 = vld.sshfl [vmem:[#allocation1] sm:$0xff pattern:$0x75316420] }
  0xb3   :  { %704 = vst [vmem:[#allocation1] ss:$2 sm:$0xff] %v698_v34  ;;  %v606_v41 = vld.sshfl [vmem:[#allocation1 + $0x10] sm:$0xff pattern:$0x75316420]  ;;  %v1304_v9 = vperm.slane %v1298_v7, 2 }
  0xb4   :  { %609 = vrot.lane.b32.xlu2 %v605_v38, %s3006_s17  ;;  %607 = vrot.lane.b32.xlu1 %v604_v39, %s3006_s17  ;;  %706 = vst [vmem:[#allocation1 + $0x10] ss:$2 sm:$0xff] %v699_v31  ;;  %v1302_v10 = vperm.slane %v1298_v7, 0  ;;  %v1303_v11 = vperm.slane %v1298_v7, 1 }
  0xba   :  { %v708_v47 = vld.sshfl [vmem:[#allocation1 + $0x8] sm:$0xff pattern:$0x75316420]  ;;  %v707_v48 = vld.sshfl [vmem:[#allocation1] sm:$0xff pattern:$0x75316420] }
  0xbb   :  { %712 = vrot.lane.b32.xlu0 %v708_v47, %s3007_s18  ;;  %807 = vst [vmem:[#allocation1] ss:$2 sm:$0xff] %v801_v45  ;;  %v709_v50 = vld.sshfl [vmem:[#allocation1 + $0x10] sm:$0xff pattern:$0x75316420] }
  0xbc   :  { %611 = vrot.lane.b32.xlu1 %v606_v41, %s3006_s17  ;;  %710 = vrot.lane.b32.xlu2 %v707_v48, %s3007_s18  ;;  %809 = vst [vmem:[#allocation1 + $0x10] ss:$2 sm:$0xff] %v802_v44 }
  0xc2   :  { %v810_v55 = vld.sshfl [vmem:[#allocation1] sm:$0xff pattern:$0x75316420]  ;;  %v811_v56 = vld.sshfl [vmem:[#allocation1 + $0x8] sm:$0xff pattern:$0x75316420] }
  0xc3   :  { %v812_v59 = vld.sshfl [vmem:[#allocation1 + $0x10] sm:$0xff pattern:$0x75316420]  ;;  %813 = vrot.lane.b32.xlu0 %v810_v55, %s3008_s19  ;;  %910 = vst [vmem:[#allocation1] ss:$2 sm:$0xff] %v904_v54 }
  0xc4   :  { %912 = vst [vmem:[#allocation1 + $0x10] ss:$2 sm:$0xff] %v905_v53  ;;  %714 = vrot.lane.b32.xlu2 %v709_v50, %s3007_s18  ;;  %v2719_v54 = vld [vmem:[%s3838_s2 + $0x30] sm:$0xff] }
  0xca   :  { %v913_v60 = vld.sshfl [vmem:[#allocation1] sm:$0xff pattern:$0x75316420]  ;;  %v914_v62 = vld.sshfl [vmem:[#allocation1 + $0x8] sm:$0xff pattern:$0x75316420] }
  0xcb   :  { %1031 = vst [vmem:[#allocation1] sm:$0xff] %v3078_v1  ;;  %1577 = vrot.lane.b32.xlu0 %v3118_v32, %s2999_s26  ;;  %v915_v5 = vld.sshfl [vmem:[#allocation1 + $0x10] sm:$0xff pattern:$0x75316420] }
  0xcc   :  { %1032 = vst [vmem:[#allocation1 + $0x8] sm:$0xff] %v3083_v2 }
  0xd3   :  { %v1034_v35 = vld [vmem:[#allocation1 + $0x1] ss:$4 sm:$0xff] }
  0xd4   :  { %1035 = vrot.lane.b32.xlu1 %v1034_v35, %s2994_s7  ;;  %1197 = vst [vmem:[#allocation1] sm:$0xff] %v3078_v1  ;;  %v2726_v35 = vld [vmem:[%s3838_s2 + $0x38] sm:$0xff] }
  0xd5   :  { %1198 = vst [vmem:[#allocation1 + $0x8] sm:$0xff] %v3083_v2 }
  0xdc   :  { %815 = vrot.lane.b32.xlu1 %v811_v56, %s3008_s19  ;;  %v1200_v36 = vld [vmem:[#allocation1 + $0x2] ss:$4 sm:$0xff] }
  0xdd   :  { %1201 = vrot.lane.b32.xlu2 %v1200_v36, %s2997_s24  ;;  %1385 = vst [vmem:[#allocation1] sm:$0xff] %v3078_v1 }
  0xde   :  { %1386 = vst [vmem:[#allocation1 + $0x8] sm:$0xff] %v3083_v2 }
  0xe4   :  { %916 = vrot.lane.b32.xlu1 %v913_v60, %s3009_s20 }
  0xe5   :  { %817 = vrot.lane.b32.xlu2 %v812_v59, %s3008_s19  ;;  %v1388_v63 = vld [vmem:[#allocation1 + $0x1] ss:$4 sm:$0xff]  ;;  %v107_v8 = vpop.permute.xlu2 %106 }
  0xe6   :  { %1389 = vrot.lane.b32.xlu0 %v1388_v63, %s2995_s8  ;;  %1481 = vst [vmem:[#allocation1] sm:$0xff] %v3078_v1 }
  0xe7   :  { %1482 = vst [vmem:[#allocation1 + $0x8] sm:$0xff] %v3083_v2 }
  0xed   :  { %918 = vrot.lane.b32.xlu2 %v914_v62, %s3009_s20 }
  0xee   :  { %920 = vrot.lane.b32.xlu0 %v915_v5, %s3009_s20  ;;  %v1484_v6 = vld [vmem:[#allocation1 + $0x2] ss:$4 sm:$0xff] }
  0xef   :  { %1485 = vrot.lane.b32.xlu1 %v1484_v6, %s2998_s25  ;;  %1669 = vst [vmem:[#allocation1] sm:$0xff] %v3078_v1 }
  0xf0   :  { %1670 = vst [vmem:[#allocation1 + $0x8] sm:$0xff] %v3083_v2 }
  0xf5   :  { %1309 = vrot.lane.b32.xlu2 %v1304_v9, %s3004_s15  ;;  %v298_v14 = vpop.permute.xlu2 %297 }
  0xf6   :  { %1305 = vrot.lane.b32.xlu0 %v1302_v10, %s3004_s15 }
  0xf7   :  { %1307 = vrot.lane.b32.xlu1 %v1303_v11, %s3004_s15  ;;  %v1672_v12 = vld [vmem:[#allocation1 + $0x1] ss:$4 sm:$0xff] }
  0xf8   :  { %1765 = vst [vmem:[#allocation1] sm:$0xff] %v3078_v1  ;;  %v2678_v1 = vld [vmem:[%s3838_s2 + $0x8] sm:$0xff] }
  0xf9   :  { %1766 = vst [vmem:[#allocation1 + $0x8] sm:$0xff] %v3083_v2 }
  0xfd   :  { %v105_v15 = vpop.permute.xlu1 %104  ;;  %v402_v2 = vpop.permute.xlu2 %401 }
  0xfe   :  { %v109_v16 = vpop.permute.xlu0 %108  ;;  %v111_v17 = vsel %vm110_vm14, %v105_v15, %v107_v8  ;;  %v3333_v15 = vmul.f32 %v3118_v32, %v3212_v4 }
  0xff   :  { %1673 = vrot.lane.b32.xlu1 %v1672_v12, %s3000_s27  ;;  %2683 = vmatpush.msk.msra.mxu2 %vm117_vm12, %v109_v16  ;;  %v112_v18 = vsel %vm110_vm14, %v107_v8, %v109_v16  ;;  %v2733_v12 = vld [vmem:[%s3838_s2 + $0x40] sm:$0xff] }
 0x100   :  { %2679 = vmatpush.msk.msra.mxu0 %vm117_vm12, %v111_v17  ;;  %2681 = vmatpush.msk.msra.mxu1 %vm117_vm12, %v112_v18  ;;  %v1768_v19 = vld [vmem:[#allocation1 + $0x2] ss:$4 sm:$0xff] }
 0x101   :  { %2684 = vmatmul.msk.f32.vlgmr.msra.gmra.mxu2 %vm113_vm13, %v2678_v1  ;;  %2680 = vmatmul.msk.f32.vlgmr.msra.gmra.mxu0 %vm113_vm13, %v2678_v1 }
 0x102   :  { %2687 = vmatpush.msk.msrb.mxu0 %vm117_vm12, %v3147_v58  ;;  %2689 = vmatpush.msk.msrb.mxu1 %vm117_vm12, %v3149_v61  ;;  %v2691_v58 = vld [vmem:[%s3838_s2 + $0x10] sm:$0xff] }
 0x103   :  { %2682 = vmatmul.msk.f32.vlgmr.msra.gmra.mxu1 %vm113_vm13, %v2678_v1 }
 0x106   :  { %v509_v61 = vpop.permute.xlu2 %508 }
 0x107   :  { %1769 = vrot.lane.b32.xlu1 %v1768_v19, %s3001_s28 }
 0x109   :  { %2688 = vmatmul.msk.f32.vlgmr.msrb.gmra.mxu0 %vm113_vm13, %v67_v13 }
 0x10b   :  { %2690 = vmatmul.msk.f32.vlgmr.msrb.gmra.mxu1 %vm113_vm13, %v67_v13 }
 0x10d   :  { %v300_v20 = vpop.permute.xlu0 %299 }
 0x10e   :  { %v302_v21 = vpop.permute.xlu1 %301  ;;  %v304_v22 = vsel %vm303_vm15, %v298_v14, %v300_v20  ;;  %v610_v29 = vpop.permute.xlu2 %609 }
 0x10f   :  { %2696 = vmatpush.msk.msra.mxu0 %vm117_vm12, %v302_v21  ;;  %2692 = vmatpush.msk.msrb.mxu2 %vm117_vm12, %v304_v22  ;;  %v305_v23 = vsel %vm303_vm15, %v300_v20, %v302_v21  ;;  %v3010_v21 = vmov 0  }
 0x110   :  { %2694 = vmatpush.msk.msrb.mxu3 %vm117_vm12, %v305_v23  ;;  %2693 = vmatmul.msk.f32.vlgmr.msrb.gmra.mxu2 %vm113_vm13, %v2691_v58 }
 0x111   :  { %2695 = vmatmul.msk.f32.vlgmr.msrb.gmra.mxu3 %vm113_vm13, %v2691_v58  ;;  %2697 = vmatmul.msk.f32.vlgmr.msra.gmra.mxu0 %vm113_vm13, %v2691_v58 }
 0x112   :  { %2847 = vset.pattern.permute.xlu1 %v3010_v21  ;;  %2846 = vset.pattern.permute.xlu0 %v3010_v21 }
 0x115   :  { %v404_v24 = vpop.permute.xlu0 %403 }
 0x116   :  { %v406_v26 = vpop.permute.xlu1 %405  ;;  %v408_v27 = vsel %vm407_vm0, %v402_v2, %v404_v24  ;;  %v711_v38 = vpop.permute.xlu2 %710  ;;  %v1125_v2 = vperm.slane %v3333_v15, 0 }
 0x117   :  { %v409_v28 = vsel %vm407_vm0, %v404_v24, %v406_v26  ;;  %2703 = vmatpush.msk.msra.mxu3 %vm117_vm12, %v406_v26  ;;  %2699 = vmatpush.msk.msra.mxu1 %vm117_vm12, %v408_v27 }
 0x118   :  { %2701 = vmatpush.msk.msra.mxu2 %vm117_vm12, %v409_v28  ;;  %2700 = vmatmul.msk.f32.vlgmr.msra.gmra.mxu1 %vm113_vm13, %v2698_v25 }
 0x119   :  { %2704 = vmatmul.msk.f32.vlgmr.msra.gmra.mxu3 %vm113_vm13, %v2698_v25  ;;  %2702 = vmatmul.msk.f32.vlgmr.msra.gmra.mxu2 %vm113_vm13, %v2698_v25 }
 0x11a   :  { %2710 = vmatpush.msk.msrb.mxu2 %vm117_vm12, %v509_v61 }
 0x11d   :  { %v505_v30 = vpop.permute.xlu0 %504 }
 0x11e   :  { %v507_v31 = vpop.permute.xlu1 %506  ;;  %v715_v42 = vpop.permute.xlu2 %714 }
 0x11f   :  { %v512_v34 = vsel %vm510_vm2, %v507_v31, %v509_v61  ;;  %v511_v37 = vsel %vm510_vm2, %v505_v30, %v507_v31 }
 0x120   :  { %2706 = vmatpush.msk.msrb.mxu0 %vm117_vm12, %v511_v37  ;;  %2708 = vmatpush.msk.msrb.mxu1 %vm117_vm12, %v512_v34 }
 0x121   :  { %2707 = vmatmul.msk.f32.vlgmr.msrb.gmra.mxu0 %vm113_vm13, %v2705_v33  ;;  %2709 = vmatmul.msk.f32.vlgmr.msrb.gmra.mxu1 %vm113_vm13, %v2705_v33 }
 0x122   :  { %2711 = vmatmul.msk.f32.vlgmr.msrb.gmra.mxu2 %vm113_vm13, %v2705_v33 }
 0x126   :  { %v608_v39 = vpop.permute.xlu1 %607 }
 0x127   :  { %v614_v41 = vsel %vm613_vm3, %v608_v39, %v610_v29 }
 0x128   :  { %2713 = vmatpush.msk.msrb.mxu3 %vm117_vm12, %v614_v41 }
 0x129   :  { %2714 = vmatmul.msk.f32.vlgmr.msrb.gmra.mxu3 %vm113_vm13, %v2712_v40 }
 0x12d   :  { %v713_v43 = vpop.permute.xlu0 %712 }
 0x12e   :  { %v612_v44 = vpop.permute.xlu1 %611  ;;  %v717_v45 = vsel %vm3850_vm6, %v711_v38, %v713_v43  ;;  %v718_v46 = vsel %vm3850_vm6, %v713_v43, %v715_v42  ;;  %vm922_vm6 = vcmask 769024  }
 0x12f   :  { %v615_v47 = vsel %vm613_vm3, %v610_v29, %v612_v44  ;;  %2717 = vmatpush.msk.msra.mxu1 %vm117_vm12, %v612_v44  ;;  %2720 = vmatpush.msk.msra.mxu2 %vm117_vm12, %v717_v45 }
 0x130   :  { %2715 = vmatpush.msk.msra.mxu0 %vm117_vm12, %v615_v47  ;;  %2722 = vmatpush.msk.msra.mxu3 %vm117_vm12, %v718_v46 }
 0x131   :  { %2718 = vmatmul.msk.f32.vlgmr.msra.gmra.mxu1 %vm113_vm13, %v2712_v40  ;;  %2716 = vmatmul.msk.f32.vlgmr.msra.gmra.mxu0 %vm113_vm13, %v2712_v40 }
 0x132   :  { %2724 = vmatpush.msk.msrb.mxu0 %vm117_vm12, %v715_v42  ;;  %2721 = vmatmul.msk.f32.vlgmr.msra.gmra.mxu2 %vm113_vm13, %v2719_v54 }
 0x133   :  { %2723 = vmatmul.msk.f32.vlgmr.msra.gmra.mxu3 %vm113_vm13, %v2719_v54 }
 0x135   :  { %v814_v59 = vpop.permute.xlu0 %813 }
 0x137   :  { %v1202_v48 = vpop.permute.xlu2 %1201 }
 0x138   :  { %v1203_v49 = vrot.slane %v1202_v48, 7 }
 0x139   :  { %2725 = vmatmul.msk.f32.vlgmr.msrb.gmra.mxu0 %vm113_vm13, %v2719_v54 }
 0x13a   :  { %v1204_v50 = vsel %vm3849_vm5, %v1203_v49, %v1202_v48  ;;  %vm819_vm5 = vcmask 777216  }
 0x13b   :  { %v1206_v51 = vmul.f32 %v1204_v50, %v3212_v4 }
 0x13d   :  { %v1211_v52 = vperm.slane %v1206_v51, 1  ;;  %v1578_v5 = vpop.permute.xlu0 %1577  ;;  %v1210_v7 = vperm.slane %v1206_v51, 0  ;;  %v1212_v17 = vperm.slane %v1206_v51, 2  ;;  %v997_v51 = vld [vmem:[%s3839_s3] sm:$0xff] }
 0x13e   :  { %v1579_v22 = vrot.slane %v1578_v5, 7 }
 0x13f   :  { %v818_v53 = vpop.permute.xlu2 %817  ;;  %1215 = vrot.lane.b32.xlu1 %v1211_v52, %s3003_s14  ;;  %v1861_v52 = vld [vmem:[%s3841_s5] sm:$0xff] }
 0x140   :  { %2731 = vmatpush.msk.msrb.mxu3 %vm117_vm12, %v818_v53  ;;  %v1580_v27 = vsel %vm693_vm9, %v1579_v22, %v1578_v5 }
 0x141   :  { %2732 = vmatmul.msk.f32.vlgmr.msrb.gmra.mxu3 %vm113_vm13, %v2726_v35  ;;  %v1582_v29 = vmul.f32 %v1580_v27, %v3212_v4 }
 0x143   :  { %v1586_v31 = vperm.slane %v1582_v29, 0  ;;  %v1587_v33 = vperm.slane %v1582_v29, 1  ;;  %v1588_v39 = vperm.slane %v1582_v29, 2 }
 0x146   :  { %v1036_v55 = vpop.permute.xlu1 %1035 }
 0x147   :  { %v1037_v56 = vrot.slane %v1036_v55, 7  ;;  %v919_v8 = vpop.permute.xlu2 %918 }
 0x149   :  { %v1038_v60 = vsel %vm87_vm4, %v1037_v56, %v1036_v55 }
 0x14a   :  { %v1040_v62 = vmul.f32 %v1038_v60, %v3212_v4 }
 0x14c   :  { %v1044_v36 = vperm.slane %v1040_v62, 0  ;;  %v1045_v63 = vperm.slane %v1040_v62, 1  ;;  %v1046_v6 = vperm.slane %v1040_v62, 2 }
 0x14e   :  { %v816_v0 = vpop.permute.xlu1 %815  ;;  %1047 = vrot.lane.b32.xlu2 %v1044_v36, %s3002_s0  ;;  %1049 = vrot.lane.b32.xlu0 %v1045_v63, %s3002_s0 }
 0x14f   :  { %v820_v3 = vsel %vm819_vm5, %v814_v59, %v816_v0  ;;  %v821_v57 = vsel %vm819_vm5, %v816_v0, %v818_v53  ;;  %v3397_v5 = vpop.permute.xlu2 %1309 }
 0x150   :  { %2727 = vmatpush.msk.msrb.mxu1 %vm117_vm12, %v820_v3  ;;  %2729 = vmatpush.msk.msrb.mxu2 %vm117_vm12, %v821_v57  ;;  %v3390_v3 = vld [vmem:[%s3840_s4] sm:$0xff] }
 0x151   :  { %2730 = vmatmul.msk.f32.vlgmr.msrb.gmra.mxu2 %vm113_vm13, %v2726_v35  ;;  %2728 = vmatmul.msk.f32.vlgmr.msrb.gmra.mxu1 %vm113_vm13, %v2726_v35 }
 0x156   :  { %v917_v9 = vpop.permute.xlu1 %916  ;;  %1051 = vrot.lane.b32.xlu2 %v1046_v6, %s3002_s0  ;;  %1213 = vrot.lane.b32.xlu0 %v1210_v7, %s3003_s14 }
 0x157   :  { %v923_v10 = vsel %vm922_vm6, %v917_v9, %v919_v8 }
 0x158   :  { %v1390_v11 = vpop.permute.xlu0 %1389  ;;  %2734 = vmatpush.msk.msra.mxu0 %vm117_vm12, %v923_v10  ;;  %v218_v10 = vpop.f32.mrf.mxu3 }
 0x159   :  { %v1391_v13 = vrot.slane %v1390_v11, 7  ;;  %2735 = vmatmul.msk.f32.vlgmr.msra.gmra.mxu0 %vm113_vm13, %v2733_v12 }
 0x15b   :  { %v1392_v14 = vsel %vm487_vm7, %v1391_v13, %v1390_v11  ;;  %v2740_v11 = vld [vmem:[%s3840_s4 + $0x8] sm:$0xff] }
 0x15c   :  { %v1394_v16 = vmul.f32 %v1392_v14, %v3212_v4 }
 0x15e   :  { %1217 = vrot.lane.b32.xlu2 %v1212_v17, %s3003_s14  ;;  %v1398_v18 = vperm.slane %v1394_v16, 0  ;;  %v1399_v1 = vperm.slane %v1394_v16, 1  ;;  %v1400_v23 = vperm.slane %v1394_v16, 2 }
 0x160   :  { %1401 = vrot.lane.b32.xlu0 %v1398_v18, %s3005_s16  ;;  %v921_v19 = vpop.permute.xlu0 %920  ;;  %1403 = vrot.lane.b32.xlu1 %v1399_v1, %s3005_s16 }
 0x161   :  { %v924_v20 = vsel %vm922_vm6, %v919_v8, %v921_v19  ;;  %v1486_v58 = vpop.permute.xlu1 %1485  ;;  %2738 = vmatpush.msk.msra.mxu2 %vm117_vm12, %v921_v19 }
 0x162   :  { %v1487_v32 = vrot.slane %v1486_v58, 7  ;;  %2736 = vmatpush.msk.msra.mxu1 %vm117_vm12, %v924_v20  ;;  %2739 = vmatmul.msk.f32.vlgmr.msra.gmra.mxu2 %vm113_vm13, %v2733_v12  ;;  %vm3854_vm12 = vcmask 785408  }
 0x163   :  { %2737 = vmatmul.msk.f32.vlgmr.msra.gmra.mxu1 %vm113_vm13, %v2733_v12  ;;  %2747 = vmatpush.msk.msrb.mxu2 %vm1022_vm1, %v1125_v2  ;;  %vm3855_vm13 = vmmov %vm3854_vm12 }
 0x164   :  { %v1488_v61 = vsel %vm590_vm8, %v1487_v32, %v1486_v58  ;;  %v2753_v32 = vld [vmem:[%s3840_s4 + $0x10] sm:$0xff] }
 0x165   :  { %v1490_v24 = vmul.f32 %v1488_v61, %v3212_v4 }
 0x166   :  { %1405 = vrot.lane.b32.xlu2 %v1400_v23, %s3005_s16 }
 0x167   :  { %v1494_v25 = vperm.slane %v1490_v24, 0  ;;  %v1495_v26 = vperm.slane %v1490_v24, 1  ;;  %v1496_v30 = vperm.slane %v1490_v24, 2 }
 0x168   :  { %v1306_v2 = vpop.permute.xlu0 %1305 }
 0x169   :  { %1497 = vrot.lane.b32.xlu0 %v1494_v25, %s3006_s17  ;;  %v3351_v28 = vpop.permute.xlu1 %1307  ;;  %1499 = vrot.lane.b32.xlu1 %v1495_v26, %s3006_s17  ;;  %v1126_v25 = vperm.slane %v3333_v15, 1  ;;  %v1127_v26 = vperm.slane %v3333_v15, 2 }
 0x16a   :  { %2748 = vmatmul.msk.f32.vlgmr.msrb.gmra.mxu2 %vm87_vm4, %v3390_v3 }
 0x16e   :  { %1501 = vrot.lane.b32.xlu2 %v1496_v30, %s3006_s17 }
 0x171   :  { %1589 = vrot.lane.b32.xlu0 %v1586_v31, %s3007_s18  ;;  %v1674_v34 = vpop.permute.xlu1 %1673  ;;  %1591 = vrot.lane.b32.xlu1 %v1587_v33, %s3007_s18  ;;  %v1311_v33 = vsel %vm407_vm0, %v1306_v2, %v3351_v28 }
 0x172   :  { %v1675_v37 = vrot.slane %v1674_v34, 7 }
 0x174   :  { %v1676_v38 = vsel %vm796_vm10, %v1675_v37, %v1674_v34  ;;  %v2760_v37 = vld [vmem:[%s3840_s4 + $0x18] sm:$0xff] }
 0x175   :  { %v1678_v40 = vmul.f32 %v1676_v38, %v3212_v4 }
 0x176   :  { %1593 = vrot.lane.b32.xlu2 %v1588_v39, %s3007_s18 }
 0x177   :  { %v1682_v41 = vperm.slane %v1678_v40, 0  ;;  %v1683_v42 = vperm.slane %v1678_v40, 1  ;;  %v1684_v46 = vperm.slane %v1678_v40, 2 }
 0x179   :  { %1685 = vrot.lane.b32.xlu0 %v1682_v41, %s3008_s19  ;;  %1687 = vrot.lane.b32.xlu1 %v1683_v42, %s3008_s19  ;;  %v1770_v43 = vpop.permute.xlu1 %1769 }
 0x17a   :  { %v1771_v44 = vrot.slane %v1770_v43, 7 }
 0x17c   :  { %v1772_v45 = vsel %vm899_vm11, %v1771_v44, %v1770_v43  ;;  %v1312_v44 = vsel %vm407_vm0, %v3351_v28, %v3397_v5 }
 0x17d   :  { %v1774_v47 = vmul.f32 %v1772_v45, %v3212_v4  ;;  %v46_v4 = vld [vmem:[%s3845_s9] sm:$0x77] }
 0x17e   :  { %1689 = vrot.lane.b32.xlu2 %v1684_v46, %s3008_s19  ;;  %v1888_v53 = vperm.slane %v46_v4, 1  ;;  %v1889_v54 = vperm.slane %v46_v4, 5  ;;  %v2025_v55 = vperm.slane %v46_v4, 6  ;;  %v2024_v62 = vperm.slane %v46_v4, 2  ;;  %v141_v9 = vpop.f32.mrf.mxu0 }
 0x17f   :  { %v1779_v48 = vperm.slane %v1774_v47, 1  ;;  %v1778_v49 = vperm.slane %v1774_v47, 0  ;;  %v1780_v50 = vperm.slane %v1774_v47, 2  ;;  %v1877_v35 = vperm.slane %v46_v4, 0 }
 0x180   :  { %v1892_v56 = vperm.slane %v1888_v53, 1  ;;  %v1893_v59 = vperm.slane %v1889_v54, 1  ;;  %v2029_v60 = vperm.slane %v2025_v55, 2  ;;  %v2028_v36 = vperm.slane %v2024_v62, 2  ;;  %v3407_v7 = vpop.f32.mrf.mxu1  ;;  %v2767_v54 = vld [vmem:[%s3840_s4 + $0x20] sm:$0xff] }
 0x181   :  { %1783 = vrot.lane.b32.xlu1 %v1779_v48, %s3009_s20  ;;  %1781 = vrot.lane.b32.xlu0 %v1778_v49, %s3009_s20  ;;  %v3381_v63 = vperm.slane %v1877_v35, 0  ;;  %v1878_v0 = vperm.slane %v46_v4, 4  ;;  %v219_v12 = vadd.f32 %v218_v10, %v141_v9  ;;  %v2781_v9 = vld [vmem:[%s3840_s4 + $0x30] sm:$0xff] }
 0x183   :  { %v3394_v57 = vperm.slane %v1878_v0, 0 }
 0x184   :  { %v3409_v8 = vpop.f32.mrf.mxu2 }
 0x186   :  { %1785 = vrot.lane.b32.xlu2 %v1780_v50, %s3009_s20  ;;  %v3422_v18 = vpop.f32.mrf.mxu0 }
 0x188   :  { %v3419_v14 = vpop.f32.mrf.mxu1 }
 0x189   :  { %1000 = vperm.xlu1 %2847, %v997_v51   ;;  %1864 = vperm.xlu0 %2846, %v1861_v52  }
 0x18e   :  { %1896 = vrot.lane.b32.xlu2 %v1892_v56, %s2994_s7  ;;  %v3436_v23 = vpop.f32.mrf.mxu0 }
 0x191   :  { %1898 = vrot.lane.b32.xlu1 %v1893_v59, %s2994_s7  ;;  %2034 = vrot.lane.b32.xlu0 %v2029_v60, %s2997_s24 }
 0x193   :  { %v332_v16 = vpop.f32.mrf.mxu2 }
 0x194   :  { %v375_v17 = vadd.f32 %v332_v16, %v219_v12  ;;  %v3424_v1 = vpop.f32.mrf.mxu3 }
 0x195   :  { %v436_v21 = vpop.f32.mrf.mxu1 }
 0x196   :  { %2032 = vrot.lane.b32.xlu2 %v2028_v36, %s2997_s24  ;;  %v479_v61 = vadd.f32 %v436_v21, %v375_v17 }
 0x199   :  { %2208 = vrot.lane.b32.xlu1 %v1892_v56, %s2995_s8  ;;  %2121 = vrot.lane.b32.xlu0 %v3381_v63, %s2996_s23 }
 0x19c   :  { %v3434_v22 = vpop.f32.mrf.mxu2  ;;  %v3438_v24 = vpop.f32.mrf.mxu3 }
 0x19e   :  { %2210 = vrot.lane.b32.xlu2 %v1893_v59, %s2995_s8  ;;  %v3452_v15 = vpop.f32.mrf.mxu1  ;;  %v539_v38 = vpop.f32.mrf.mxu0 }
 0x19f   :  { %v582_v39 = vadd.f32 %v539_v38, %v479_v61  ;;  %v3549_v38 = vld [vmem:[%s3846_s10] sm:$0x7] }
 0x1a1   :  { %2123 = vrot.lane.b32.xlu1 %v3394_v57, %s2996_s23  ;;  %2384 = vrot.lane.b32.xlu0 %v3394_v57, %s2999_s26 }
 0x1a5   :  { %v3454_v34 = vpop.f32.mrf.mxu2 }
 0x1a6   :  { %2382 = vrot.lane.b32.xlu2 %v3381_v63, %s2999_s26 }
 0x1a8   :  { %v1048_v6 = vpop.permute.xlu2 %1047 }
 0x1a9   :  { %2295 = vrot.lane.b32.xlu1 %v2028_v36, %s2998_s25  ;;  %2556 = vrot.lane.b32.xlu0 %v2028_v36, %s3001_s28  ;;  %v2774_v36 = vld [vmem:[%s3840_s4 + $0x28] sm:$0xff] }
 0x1ac   :  { %v642_v41 = vpop.f32.mrf.mxu3 }
 0x1ad   :  { %v685_v43 = vadd.f32 %v642_v41, %v582_v39 }
 0x1ae   :  { %2297 = vrot.lane.b32.xlu2 %v2029_v60, %s2998_s25  ;;  %v3472_v45 = vpop.f32.mrf.mxu1 }
 0x1b0   :  { %v1052_v13 = vpop.permute.xlu2 %1051 }
 0x1b1   :  { %2745 = vmatpush.msk.msrb.mxu1 %vm1022_vm1, %v1052_v13  ;;  %2558 = vrot.lane.b32.xlu1 %v2029_v60, %s3001_s28  ;;  %v1216_v19 = vpop.permute.xlu1 %1215  ;;  %v239_v60 = vadd.f32 %v3422_v18, %v3407_v7 }
 0x1b2   :  { %2471 = vrot.lane.b32.xlu0 %v1893_v59, %s3000_s27  ;;  %2746 = vmatmul.msk.f32.vlgmr.msrb.gmra.mxu1 %vm87_vm4, %v2740_v11  ;;  %v259_v59 = vadd.f32 %v3419_v14, %v3409_v8 }
 0x1b3   :  { %v376_v0 = vadd.f32 %v3424_v1, %v239_v60 }
 0x1b5   :  { %v745_v46 = vpop.f32.mrf.mxu2  ;;  %v480_v10 = vadd.f32 %v3434_v22, %v376_v0 }
 0x1b6   :  { %2469 = vrot.lane.b32.xlu2 %v1892_v56, %s3000_s27  ;;  %v788_v47 = vadd.f32 %v745_v46, %v685_v43  ;;  %v765_v14 = vpop.f32.mrf.mxu3  ;;  %v3852_v43 = vperm.slane %v3549_v38, 2 }
 0x1b7   :  { %v583_v16 = vadd.f32 %v3452_v15, %v480_v10 }
 0x1b8   :  { %v1218_v20 = vpop.permute.xlu2 %1217 }
 0x1b9   :  { %v1220_v58 = vsel %vm303_vm15, %v1216_v19, %v1218_v20 }
 0x1ba   :  { %2756 = vmatpush.msk.msra.mxu2 %vm1022_vm1, %v1220_v58 }
 0x1bb   :  { %2757 = vmatmul.msk.f32.vlgmr.msra.gmra.mxu2 %vm87_vm4, %v2753_v32 }
 0x1bc   :  { %2765 = vmatpush.msk.msrb.mxu2 %vm1022_vm1, %v3397_v5 }
 0x1c0   :  { %v1050_v27 = vpop.permute.xlu0 %1049  ;;  %v1406_v31 = vpop.permute.xlu2 %1405 }
 0x1c1   :  { %v1053_v29 = vsel %vm110_vm14, %v1048_v6, %v1050_v27  ;;  %v1054_v30 = vsel %vm110_vm14, %v1050_v27, %v1052_v13  ;;  %v662_v6 = vpop.f32.mrf.mxu0 }
 0x1c2   :  { %2741 = vmatpush.msk.msra.mxu3 %vm1022_vm1, %v1053_v29  ;;  %2743 = vmatpush.msk.msrb.mxu0 %vm1022_vm1, %v1054_v30  ;;  %v686_v21 = vadd.f32 %v662_v6, %v583_v16  ;;  %v2795_v29 = vld [vmem:[%s3840_s4 + $0x40] sm:$0xff] }
 0x1c3   :  { %2742 = vmatmul.msk.f32.vlgmr.msra.gmra.mxu3 %vm87_vm4, %v2740_v11  ;;  %2744 = vmatmul.msk.f32.vlgmr.msrb.gmra.mxu0 %vm87_vm4, %v2740_v11 }
 0x1c4   :  { %2749 = vmatpush.msk.msrb.mxu3 %vm1022_vm1, %v1126_v25  ;;  %2751 = vmatpush.msk.msra.mxu0 %vm1022_vm1, %v1127_v26  ;;  %v888_v25 = vpop.f32.mrf.mxu3 }
 0x1c5   :  { %2766 = vmatmul.msk.f32.vlgmr.msrb.gmra.mxu2 %vm87_vm4, %v2760_v37 }
 0x1c6   :  { %2758 = vmatpush.msk.msra.mxu3 %vm1022_vm1, %v1218_v20  ;;  %2761 = vmatpush.msk.msrb.mxu0 %vm1022_vm1, %v1311_v33 }
 0x1c8   :  { %v1214_v40 = vpop.permute.xlu0 %1213  ;;  %v1502_v48 = vpop.permute.xlu2 %1501 }
 0x1c9   :  { %v1219_v42 = vsel %vm303_vm15, %v1214_v40, %v1216_v19  ;;  %v2788_v19 = vld [vmem:[%s3840_s4 + $0x38] sm:$0xff]  ;;  %v785_v61 = vpop.f32.mrf.mxu0 }
 0x1ca   :  { %2754 = vmatpush.msk.msra.mxu1 %vm1022_vm1, %v1219_v42  ;;  %v3853_v42 = vperm.slane %v3549_v38, 1 }
 0x1cb   :  { %2750 = vmatmul.msk.f32.vlgmr.msrb.gmra.mxu3 %vm87_vm4, %v3390_v3  ;;  %2752 = vmatmul.msk.f32.vlgmr.msra.gmra.mxu0 %vm87_vm4, %v3390_v3  ;;  %v377_v3 = vadd.f32 %v3436_v23, %v259_v59  ;;  %v789_v23 = vadd.f32 %v765_v14, %v686_v21 }
 0x1cc   :  { %2763 = vmatpush.msk.msrb.mxu1 %vm1022_vm1, %v1312_v44 }
 0x1cd   :  { %2755 = vmatmul.msk.f32.vlgmr.msra.gmra.mxu1 %vm87_vm4, %v2753_v32  ;;  %v481_v11 = vadd.f32 %v3438_v24, %v377_v3 }
 0x1ce   :  { %2772 = vmatpush.msk.msra.mxu1 %vm1022_vm1, %v1406_v31  ;;  %v848_v52 = vpop.f32.mrf.mxu1 }
 0x1cf   :  { %v3484_v4 = vadd.f32 %v848_v52, %v788_v47  ;;  %v584_v17 = vadd.f32 %v3454_v34, %v481_v11 }
 0x1d0   :  { %v1594_v53 = vpop.permute.xlu2 %1593 }
 0x1d2   :  { %v1402_v49 = vpop.permute.xlu0 %1401  ;;  %v1404_v50 = vpop.permute.xlu1 %1403 }
 0x1d3   :  { %v1407_v28 = vsel %vm510_vm2, %v1402_v49, %v1404_v50  ;;  %v1408_v51 = vsel %vm510_vm2, %v1404_v50, %v1406_v31  ;;  %2759 = vmatmul.msk.f32.vlgmr.msra.gmra.mxu3 %vm87_vm4, %v2753_v32  ;;  %2762 = vmatmul.msk.f32.vlgmr.msrb.gmra.mxu0 %vm87_vm4, %v2760_v37  ;;  %v687_v32 = vadd.f32 %v3472_v45, %v584_v17 }
 0x1d4   :  { %2768 = vmatpush.msk.msrb.mxu3 %vm1022_vm1, %v1407_v28  ;;  %2770 = vmatpush.msk.msra.mxu0 %vm1022_vm1, %v1408_v51  ;;  %v868_v18 = vpop.f32.mrf.mxu2  ;;  %v3851_v51 = vperm.slane %v3549_v38, 0 }
 0x1d5   :  { %2764 = vmatmul.msk.f32.vlgmr.msrb.gmra.mxu1 %vm87_vm4, %v2760_v37  ;;  %v790_v24 = vadd.f32 %v785_v61, %v687_v32  ;;  %v892_v33 = vadd.f32 %v868_v18, %v789_v23 }
 0x1d6   :  { %2779 = vmatpush.msk.msrb.mxu0 %vm1022_vm1, %v1502_v48 }
 0x1d7   :  { %v893_v15 = vadd.f32 %v888_v25, %v790_v24 }
 0x1d8   :  { %v1690_v5 = vpop.permute.xlu2 %1689 }
 0x1db   :  { %v1498_v55 = vpop.permute.xlu0 %1497  ;;  %v1500_v56 = vpop.permute.xlu1 %1499  ;;  %2769 = vmatmul.msk.f32.vlgmr.msrb.gmra.mxu3 %vm87_vm4, %v2767_v54  ;;  %2771 = vmatmul.msk.f32.vlgmr.msra.gmra.mxu0 %vm87_vm4, %v2767_v54 }
 0x1dc   :  { %v1503_v62 = vsel %vm613_vm3, %v1498_v55, %v1500_v56  ;;  %v1504_v35 = vsel %vm613_vm3, %v1500_v56, %v1502_v48  ;;  %v951_v48 = vpop.f32.mrf.mxu0 }
 0x1dd   :  { %2775 = vmatpush.msk.msra.mxu2 %vm1022_vm1, %v1503_v62  ;;  %2777 = vmatpush.msk.msra.mxu3 %vm1022_vm1, %v1504_v35  ;;  %v994_v28 = vadd.f32 %v951_v48, %v3484_v4 }
 0x1de   :  { %2773 = vmatmul.msk.f32.vlgmr.msra.gmra.mxu1 %vm87_vm4, %v2767_v54  ;;  %2776 = vmatmul.msk.f32.vlgmr.msra.gmra.mxu2 %vm87_vm4, %v2774_v36 }
 0x1df   :  { %2786 = vmatpush.msk.msrb.mxu3 %vm1022_vm1, %v1594_v53 }
 0x1e0   :  { %v1786_v22 = vpop.permute.xlu2 %1785  ;;  %v971_v34 = vpop.f32.mrf.mxu1 }
 0x1e1   :  { %v995_v39 = vadd.f32 %v971_v34, %v892_v33 }
 0x1e3   :  { %v1590_v7 = vpop.permute.xlu0 %1589  ;;  %v1592_v8 = vpop.permute.xlu1 %1591  ;;  %2778 = vmatmul.msk.f32.vlgmr.msra.gmra.mxu3 %vm87_vm4, %v2774_v36  ;;  %2780 = vmatmul.msk.f32.vlgmr.msrb.gmra.mxu0 %vm87_vm4, %v2774_v36 }
 0x1e4   :  { %v1595_v12 = vsel %vm3854_vm12, %v1590_v7, %v1592_v8  ;;  %v1596_v13 = vsel %vm3855_vm13, %v1592_v8, %v1594_v53  ;;  %vm3856_vm12 = vcmask 15360  }
 0x1e5   :  { %2782 = vmatpush.msk.msrb.mxu1 %vm1022_vm1, %v1595_v12  ;;  %2784 = vmatpush.msk.msrb.mxu2 %vm1022_vm1, %v1596_v13  ;;  %v991_v37 = vpop.f32.mrf.mxu2 }
 0x1e6   :  { %2783 = vmatmul.msk.f32.vlgmr.msrb.gmra.mxu1 %vm87_vm4, %v2781_v9  ;;  %2785 = vmatmul.msk.f32.vlgmr.msrb.gmra.mxu2 %vm87_vm4, %v2781_v9  ;;  %v996_v40 = vadd.f32 %v991_v37, %v893_v15 }
 0x1e7   :  { %2793 = vmatpush.msk.msra.mxu2 %vm1022_vm1, %v1690_v5 }
 0x1e8   :  { %v3551_v41 = vpop.permute.xlu2 %1896 }
 0x1eb   :  { %v1686_v1 = vpop.permute.xlu0 %1685  ;;  %v1688_v2 = vpop.permute.xlu1 %1687  ;;  %2787 = vmatmul.msk.f32.vlgmr.msrb.gmra.mxu3 %vm87_vm4, %v2781_v9 }
 0x1ec   :  { %v1691_v20 = vsel %vm819_vm5, %v1686_v1, %v1688_v2  ;;  %v1692_v58 = vsel %vm819_vm5, %v1688_v2, %v1690_v5 }
 0x1ed   :  { %2789 = vmatpush.msk.msra.mxu0 %vm1022_vm1, %v1691_v20  ;;  %2791 = vmatpush.msk.msra.mxu1 %vm1022_vm1, %v1692_v58 }
 0x1ee   :  { %2790 = vmatmul.msk.f32.vlgmr.msra.gmra.mxu0 %vm87_vm4, %v2788_v19  ;;  %2792 = vmatmul.msk.f32.vlgmr.msra.gmra.mxu1 %vm87_vm4, %v2788_v19 }
 0x1ef   :  { %2800 = vmatpush.msk.msrb.mxu1 %vm1022_vm1, %v1786_v22  ;;  %2794 = vmatmul.msk.f32.vlgmr.msra.gmra.mxu2 %vm87_vm4, %v2788_v19 }
 0x1f0   :  { %v3571_v59 = vpop.permute.xlu2 %2032 }
 0x1f3   :  { %v1782_v26 = vpop.permute.xlu0 %1781  ;;  %v1784_v27 = vpop.permute.xlu1 %1783 }
 0x1f4   :  { %v1787_v30 = vsel %vm922_vm6, %v1782_v26, %v1784_v27  ;;  %v1788_v31 = vsel %vm922_vm6, %v1784_v27, %v1786_v22 }
 0x1f5   :  { %2796 = vmatpush.msk.msra.mxu3 %vm1022_vm1, %v1787_v30  ;;  %2798 = vmatpush.msk.msrb.mxu0 %vm1022_vm1, %v1788_v31 }
 0x1f6   :  { %2797 = vmatmul.msk.f32.vlgmr.msra.gmra.mxu3 %vm87_vm4, %v2795_v29  ;;  %2799 = vmatmul.msk.f32.vlgmr.msrb.gmra.mxu0 %vm87_vm4, %v2795_v29 }
 0x1f7   :  { %2801 = vmatmul.msk.f32.vlgmr.msrb.gmra.mxu1 %vm87_vm4, %v2795_v29 }
 0x1f8   :  { %v3594_v7 = vpop.permute.xlu2 %2210 }
 0x1fb   :  { %v1001_v44 = vpop.permute.xlu1 %1000  ;;  %v3555_v45 = vpop.permute.xlu0 %1864 }
 0x1fc   :  { %v1004_v46 = vadd.f32 %v1001_v44, %v995_v39  ;;  %v1005_v47 = vadd.f32 %v1001_v44, %v996_v40  ;;  %v1003_v53 = vadd.f32 %v1001_v44, %v994_v28 }
 0x1fe   :  { %v1014_v49 = vmul.f32 %v3853_v42, %v1004_v46  ;;  %v1015_v50 = vmul.f32 %v3852_v43, %v1005_v47  ;;  %v3567_v55 = vmul.f32 %v3851_v51, %v1003_v53 }
 0x200   :  { %v1018_v52 = vmax.f32 %v1015_v50, 0.0  ;;  %v3563_v54 = vmax.f32 %v1014_v49, 0.0  ;;  %v3618_v1 = vpop.permute.xlu2 %2382  ;;  %v1154_v50 = vpop.f32.mrf.mxu2 }
 0x202   :  { %v2218_v10 = vmul.f32 %v3594_v7, %v1018_v52 }
 0x203   :  { %v3569_v56 = vpop.permute.xlu1 %1898  ;;  %v3581_v35 = vpop.permute.xlu0 %2034 }
 0x204   :  { %v3576_v60 = vsel %vm87_vm4, %v3551_v41, %v3569_v56  ;;  %v1906_v4 = vmul.f32 %v3569_v56, %v1018_v52  ;;  %v3586_v36 = vsel %vm3856_vm12, %v3571_v59, %v3581_v35  ;;  %v2042_v5 = vmul.f32 %v3581_v35, %v1018_v52 }
 0x205   :  { %v1905_v62 = vmul.f32 %v3576_v60, %v3563_v54  ;;  %v2041_v3 = vmul.f32 %v3586_v36, %v3563_v54  ;;  %vm3857_vm4 = vcmask 130048  }
 0x206   :  { %vm3867_vm13 = vmmov %vm3857_vm4 }
 0x207   :  { %v2848_v0 = vpack.i.bf16 %v1906_v4, %v1905_v62  ;;  %v2853_v8 = vpack.i.bf16 %v2042_v5, %v2041_v3  ;;  %vm3869_vm12 = vmmov %vm3857_vm4 }
 0x208   :  { %v3633_v61 = vpop.permute.xlu2 %2297 }
 0x209   :  { %2849 = vrot.lane.b32.xlu2 %v2848_v0, %s3002_s0  ;;  %v2305_v24 = vmul.f32 %v3633_v61, %v1018_v52 }
 0x20b   :  { %v3592_v6 = vpop.permute.xlu1 %2208  ;;  %v3605_v12 = vpop.permute.xlu0 %2121 }
 0x20c   :  { %v3599_v9 = vsel %vm487_vm7, %v3592_v6, %v3594_v7  ;;  %vm3861_vm7 = vmmov %vm3857_vm4 }
 0x20d   :  { %v2217_v11 = vmul.f32 %v3599_v9, %v3563_v54 }
 0x20f   :  { %v2858_v14 = vpack.i.bf16 %v2218_v10, %v2217_v11 }
 0x210   :  { %v3657_v15 = vpop.permute.xlu2 %2469 }
 0x211   :  { %2854 = vrot.lane.b32.xlu2 %v2853_v8, %s3003_s14 }
 0x213   :  { %v3607_v13 = vpop.permute.xlu1 %2123  ;;  %v3620_v2 = vpop.permute.xlu0 %2384 }
 0x214   :  { %v3612_v16 = vsel %vm3857_vm4, %v3605_v12, %v3607_v13  ;;  %v2131_v18 = vmul.f32 %v3607_v13, %v1018_v52  ;;  %v3625_v20 = vsel %vm693_vm9, %v3618_v1, %v3620_v2  ;;  %v2392_v32 = vmul.f32 %v3620_v2, %v1018_v52  ;;  %vm3863_vm9 = vmmov %vm3857_vm4 }
 0x215   :  { %v2130_v17 = vmul.f32 %v3612_v16, %v3563_v54  ;;  %v2391_v58 = vmul.f32 %v3625_v20, %v3563_v54 }
 0x217   :  { %v2863_v19 = vpack.i.bf16 %v2131_v18, %v2130_v17  ;;  %v2868_v22 = vpack.i.bf16 %v2392_v32, %v2391_v58 }
 0x219   :  { %2859 = vrot.lane.b32.xlu2 %v2858_v14, %s3005_s16 }
 0x21b   :  { %v3631_v21 = vpop.permute.xlu1 %2295  ;;  %v3642_v25 = vpop.permute.xlu0 %2556 }
 0x21c   :  { %v3638_v23 = vsel %vm590_vm8, %v3631_v21, %v3633_v61  ;;  %vm3862_vm8 = vmmov %vm3857_vm4 }
 0x21d   :  { %v2304_v26 = vmul.f32 %v3638_v23, %v3563_v54 }
 0x21f   :  { %v2873_v29 = vpack.i.bf16 %v2305_v24, %v2304_v26 }
 0x221   :  { %2864 = vrot.lane.b32.xlu2 %v2863_v19, %s3004_s15 }
 0x223   :  { %v3646_v27 = vpop.permute.xlu1 %2558 }
 0x224   :  { %v3651_v30 = vsel %vm899_vm11, %v3642_v25, %v3646_v27  ;;  %v2566_v33 = vmul.f32 %v3646_v27, %v1018_v52  ;;  %v3659_v34 = vpop.permute.xlu0 %2471  ;;  %vm3865_vm11 = vmmov %vm3857_vm4 }
 0x225   :  { %v2565_v31 = vmul.f32 %v3651_v30, %v3563_v54  ;;  %v3664_v39 = vsel %vm796_vm10, %v3657_v15, %v3659_v34  ;;  %v2479_v44 = vmul.f32 %v3659_v34, %v1018_v52  ;;  %vm3864_vm10 = vmmov %vm3857_vm4 }
 0x226   :  { %v2478_v40 = vmul.f32 %v3664_v39, %v3563_v54 }
 0x227   :  { %v2878_v37 = vpack.i.bf16 %v2566_v33, %v2565_v31 }
 0x228   :  { %v2958_v46 = vpack.i.bf16 %v2479_v44, %v2478_v40 }
 0x229   :  { %2869 = vrot.lane.b32.xlu2 %v2868_v22, %s3007_s18 }
 0x22f   :  { %v1121_v48 = vpop.f32.mrf.mxu1 }
 0x231   :  { %2874 = vrot.lane.b32.xlu2 %v2873_v29, %s3006_s17 }
 0x239   :  { %2879 = vrot.lane.b32.xlu2 %v2878_v37, %s3009_s20 }
 0x23e   :  { %v1267_v62 = vpop.f32.mrf.mxu2 }
 0x240   :  { %v1101_v47 = vpop.f32.mrf.mxu0 }
 0x241   :  { %2959 = vrot.lane.b32.xlu2 %v2958_v46, %s3008_s19 }
 0x246   :  { %v1081_v49 = vpop.f32.mrf.mxu3 }
 0x247   :  { %v1155_v24 = vadd.f32 %v1154_v50, %v1081_v49 }
 0x248   :  { %v1194_v28 = vpop.f32.mrf.mxu0  ;;  %v1379_v8 = vpop.f32.mrf.mxu2 }
 0x249   :  { %v1195_v52 = vadd.f32 %v1194_v28, %v1121_v48 }
 0x24a   :  { %v1247_v53 = vpop.f32.mrf.mxu1 }
 0x24b   :  { %v1290_v37 = vadd.f32 %v1247_v53, %v1155_v24 }
 0x24e   :  { %v1174_v4 = vpop.f32.mrf.mxu3 }
 0x24f   :  { %v1175_v14 = vadd.f32 %v1174_v4, %v1101_v47 }
 0x250   :  { %v1339_v0 = vpop.f32.mrf.mxu0 }
 0x251   :  { %v1291_v19 = vadd.f32 %v1267_v62, %v1175_v14  ;;  %v1382_v43 = vadd.f32 %v1339_v0, %v1290_v37  ;;  %v3860_v37 = vperm.slane %v3549_v38, 0 }
 0x252   :  { %v1359_v3 = vpop.f32.mrf.mxu1 }
 0x253   :  { %v1383_v26 = vadd.f32 %v1359_v3, %v1291_v19 }
 0x256   :  { %v1287_v5 = vpop.f32.mrf.mxu3 }
 0x257   :  { %v1292_v32 = vadd.f32 %v1287_v5, %v1195_v52 }
 0x258   :  { %v1455_v10 = vpop.f32.mrf.mxu0 }
 0x259   :  { %v1384_v31 = vadd.f32 %v1379_v8, %v1292_v32  ;;  %v1479_v33 = vadd.f32 %v1455_v10, %v1383_v26 }
 0x25b   :  { %v1475_v11 = vpop.f32.mrf.mxu1 }
 0x25c   :  { %v1480_v46 = vadd.f32 %v1475_v11, %v1384_v31 }
 0x25e   :  { %v1435_v17 = vpop.f32.mrf.mxu3 }
 0x25f   :  { %v1478_v4 = vadd.f32 %v1435_v17, %v1382_v43  ;;  %v3859_v17 = vperm.slane %v3549_v38, 2 }
 0x260   :  { %v1571_v18 = vpop.f32.mrf.mxu0 }
 0x261   :  { %v1531_v58 = vpop.f32.mrf.mxu2  ;;  %v1576_v47 = vadd.f32 %v1571_v18, %v1480_v46  ;;  %v3858_v18 = vperm.slane %v3549_v38, 1 }
 0x262   :  { %v1574_v14 = vadd.f32 %v1531_v58, %v1478_v4 }
 0x263   :  { %v1623_v22 = vpop.f32.mrf.mxu1 }
 0x264   :  { %v1666_v53 = vadd.f32 %v1623_v22, %v1574_v14 }
 0x266   :  { %v1551_v29 = vpop.f32.mrf.mxu3 }
 0x267   :  { %v1575_v40 = vadd.f32 %v1551_v29, %v1479_v33  ;;  %v1016_v29 = vmax.f32 %v3567_v55, 0.0 }
 0x269   :  { %v1643_v44 = vpop.f32.mrf.mxu2  ;;  %v2390_v38 = vmul.f32 %v3618_v1, %v1016_v29 }
 0x26a   :  { %v1667_v48 = vadd.f32 %v1643_v44, %v1575_v40  ;;  %v1884_v44 = vmul.f32 %v3394_v57, %v3563_v54 }
 0x26b   :  { %v1719_v51 = vpop.f32.mrf.mxu0  ;;  %v1739_v42 = vpop.f32.mrf.mxu1 }
 0x26c   :  { %v1763_v5 = vadd.f32 %v1739_v42, %v1667_v48  ;;  %v1762_v0 = vadd.f32 %v1719_v51, %v1666_v53 }
 0x26e   :  { %v1663_v28 = vpop.f32.mrf.mxu3 }
 0x26f   :  { %v1668_v62 = vadd.f32 %v1663_v28, %v1576_v47  ;;  %v1883_v47 = vmul.f32 %v3381_v63, %v1016_v29 }
 0x272   :  { %v1759_v52 = vpop.f32.mrf.mxu2 }
 0x273   :  { %v1764_v49 = vadd.f32 %v1759_v52, %v1668_v62  ;;  %v1835_v50 = vpop.f32.mrf.mxu0  ;;  %v2129_v62 = vmul.f32 %v3605_v12, %v1016_v29 }
 0x274   :  { %v1859_v3 = vadd.f32 %v1835_v50, %v1763_v5  ;;  %v1855_v8 = vpop.f32.mrf.mxu1 }
 0x275   :  { %v1860_v10 = vadd.f32 %v1855_v8, %v1764_v49 }
 0x276   :  { %v1868_v19 = vadd.f32 %v3555_v45, %v1859_v3 }
 0x277   :  { %v1869_v11 = vadd.f32 %v3555_v45, %v1860_v10 }
 0x278   :  { %v1871_v43 = vmul.f32 %v1868_v19, %v3858_v18 }
 0x279   :  { %v1872_v32 = vmul.f32 %v1869_v11, %v3859_v17  ;;  %v1815_v58 = vpop.f32.mrf.mxu3 }
 0x27a   :  { %v3677_v42 = vmax.f32 %v1871_v43, 0.0  ;;  %v1858_v24 = vadd.f32 %v1815_v58, %v1762_v0 }
 0x27b   :  { %v3679_v26 = vmax.f32 %v1872_v32, 0.0 }
 0x27c   :  { %v1867_v22 = vadd.f32 %v3555_v45, %v1858_v24  ;;  %v1886_v31 = vmul.f32 %v3394_v57, %v3677_v42  ;;  %v1908_v51 = vmul.f32 %v3576_v60, %v3677_v42  ;;  %v1904_v45 = vmul.f32 %v3551_v41, %v1016_v29 }
 0x27d   :  { %v1909_v33 = vmul.f32 %v3569_v56, %v3679_v26  ;;  %v2040_v60 = vmul.f32 %v3571_v59, %v1016_v29  ;;  %v2216_v56 = vmul.f32 %v3592_v6, %v1016_v29  ;;  %v2045_v28 = vmul.f32 %v3581_v35, %v3679_v26 }
 0x27e   :  { %v1870_v40 = vmul.f32 %v1867_v22, %v3860_v37  ;;  %2018 = vmatpush.msra.mxu1 %v1886_v31  ;;  %v2564_v35 = vmul.f32 %v3642_v25, %v1016_v29  ;;  %v2220_v11 = vmul.f32 %v3599_v9, %v3677_v42  ;;  %v2394_v9 = vmul.f32 %v3625_v20, %v3677_v42 }
 0x27f   :  { %v2883_v46 = vpack.i.bf16 %v1909_v33, %v1908_v51  ;;  %v2568_v20 = vmul.f32 %v3651_v30, %v3677_v42  ;;  %v2850_v30 = vpop.permute.xlu2 %2849 }
 0x280   :  { %v1873_v55 = vmax.f32 %v1870_v40, 0.0  ;;  %2019 = vmatpush.msra.mxu1 %v1884_v44  ;;  %v2852_v22 = vunpack.i.h.bf16 %v2850_v30  ;;  %v2851_v31 = vunpack.i.l.bf16 %v2850_v30 }
 0x281   :  { %2884 = vrot.lane.b32.xlu1 %v2883_v46, %s3002_s0 }
 0x282   :  { %v1885_v4 = vmul.f32 %v3381_v63, %v1873_v55  ;;  %v1907_v48 = vmul.f32 %v3551_v41, %v1873_v55  ;;  %v2043_v57 = vmul.f32 %v3571_v59, %v1873_v55  ;;  %v2219_v54 = vmul.f32 %v3592_v6, %v1873_v55 }
 0x283   :  { %v2132_v14 = vmul.f32 %v3605_v12, %v1873_v55  ;;  %v2393_v5 = vmul.f32 %v3618_v1, %v1873_v55  ;;  %v2044_v63 = vmul.f32 %v3586_v36, %v3677_v42  ;;  %v2303_v41 = vmul.f32 %v3631_v21, %v1016_v29 }
 0x284   :  { %1998 = vmatpush.msra.mxu0 %v1885_v4  ;;  %v2923_v52 = vpack.i.bf16 %v1904_v45, %v1907_v48  ;;  %v2928_v49 = vpack.i.bf16 %v2040_v60, %v2043_v57  ;;  %v2933_v59 = vpack.i.bf16 %v2216_v56, %v2219_v54  ;;  %v2306_v3 = vmul.f32 %v3631_v21, %v1873_v55  ;;  %v2807_v57 = vld [vmem:[%s3842_s6 + $0x2] sm:$0x1] }
 0x285   :  { %v2938_v50 = vpack.i.bf16 %v2129_v62, %v2132_v14  ;;  %v2943_v6 = vpack.i.bf16 %v2390_v38, %v2393_v5  ;;  %v2567_v12 = vmul.f32 %v3642_v25, %v1873_v55  ;;  %v2477_v1 = vmul.f32 %v3657_v15, %v1016_v29 }
 0x286   :  { %2924 = vrot.lane.b32.xlu0 %v2923_v52, %s3002_s0  ;;  %1999 = vmatpush.msra.mxu0 %v1883_v47  ;;  %v2888_v8 = vpack.i.bf16 %v2045_v28, %v2044_v63  ;;  %v2948_v10 = vpack.i.bf16 %v2303_v41, %v2306_v3  ;;  %v2480_v36 = vmul.f32 %v3657_v15, %v1873_v55 }
 0x287   :  { %v2953_v53 = vpack.i.bf16 %v2564_v35, %v2567_v12  ;;  %v2221_v21 = vmul.f32 %v3594_v7, %v3679_v26  ;;  %v2134_v25 = vmul.f32 %v3607_v13, %v3679_v26  ;;  %v2133_v15 = vmul.f32 %v3612_v16, %v3677_v42  ;;  %v2855_v24 = vpop.permute.xlu2 %2854  ;;  %v2813_v35 = vld [vmem:[%s3842_s6 + $0x4] sm:$0x1] }
 0x288   :  { %v2963_v19 = vpack.i.bf16 %v2477_v1, %v2480_v36  ;;  %v2395_v7 = vmul.f32 %v3620_v2, %v3679_v26  ;;  %v2308_v13 = vmul.f32 %v3633_v61, %v3679_v26  ;;  %v2307_v16 = vmul.f32 %v3638_v23, %v3677_v42 }
 0x289   :  { %2889 = vrot.lane.b32.xlu1 %v2888_v8, %s3003_s14  ;;  %v2893_v0 = vpack.i.bf16 %v2221_v21, %v2220_v11  ;;  %v2898_v18 = vpack.i.bf16 %v2134_v25, %v2133_v15  ;;  %v2569_v2 = vmul.f32 %v3646_v27, %v3679_v26  ;;  %v2482_v61 = vmul.f32 %v3659_v34, %v3679_v26  ;;  %v2643_v27 = vld [vmem:[#allocation2] sm:$0x1]  ;;  %v1887_v34 = vld [vmem:[%s3842_s6] sm:$0x1]  ;;  %v2802_v26 = vld [vmem:[%s3842_s6 + $0x1] sm:$0x1] }
 0x28a   :  { %v2903_v43 = vpack.i.bf16 %v2395_v7, %v2394_v9  ;;  %v2908_v17 = vpack.i.bf16 %v2308_v13, %v2307_v16  ;;  %v2481_v23 = vmul.f32 %v3664_v39, %v3677_v42  ;;  %2806 = vmatmul.msk.f32.vlgmr.msra.gmra.mxu1 %vm3861_vm7, %v1887_v34  ;;  %2805 = vmatmul.msk.f32.vlgmr.msra.gmra.mxu0 %vm3862_vm8, %v1887_v34  ;;  %v2857_v47 = vunpack.i.h.bf16 %v2855_v24  ;;  %v2810_v7 = vld [vmem:[%s3842_s6 + $0x3] sm:$0x1]  ;;  %vm3872_vm8 = vmmov %vm3857_vm4 }
 0x28b   :  { %v2913_v32 = vpack.i.bf16 %v2569_v2, %v2568_v20  ;;  %v1931_v40 = vsel %vm110_vm14, %v2851_v31, %v2852_v22  ;;  %v2856_v60 = vunpack.i.l.bf16 %v2855_v24  ;;  %v2819_v24 = vld [vmem:[%s3842_s6 + $0x6] sm:$0x1] }
 0x28c   :  { %v2918_v58 = vpack.i.bf16 %v2482_v61, %v2481_v23 }
 0x28d   :  { %v2067_v28 = vsel %vm303_vm15, %v2856_v60, %v2857_v47 }
 0x28e   :  { %2929 = vrot.lane.b32.xlu0 %v2928_v49, %s3003_s14 }
 0x28f   :  { %v2860_v42 = vpop.permute.xlu2 %2859 }
 0x290   :  { %v2862_v49 = vunpack.i.h.bf16 %v2860_v42  ;;  %v2861_v41 = vunpack.i.l.bf16 %v2860_v42 }
 0x291   :  { %2894 = vrot.lane.b32.xlu1 %v2893_v0, %s3005_s16 }
 0x292   :  { %v2243_v1 = vsel %vm510_vm2, %v2861_v41, %v2862_v49 }
 0x296   :  { %2934 = vrot.lane.b32.xlu0 %v2933_v59, %s3005_s16 }
 0x297   :  { %v2865_v62 = vpop.permute.xlu2 %2864 }
 0x298   :  { %v2867_v21 = vunpack.i.h.bf16 %v2865_v62  ;;  %v2866_v11 = vunpack.i.l.bf16 %v2865_v62 }
 0x299   :  { %2899 = vrot.lane.b32.xlu1 %v2898_v18, %s3004_s15 }
 0x29e   :  { %2939 = vrot.lane.b32.xlu0 %v2938_v50, %s3004_s15 }
 0x29f   :  { %v2870_v36 = vpop.permute.xlu2 %2869 }
 0x2a0   :  { %v2872_v20 = vunpack.i.h.bf16 %v2870_v36 }
 0x2a1   :  { %2904 = vrot.lane.b32.xlu1 %v2903_v43, %s3007_s18  ;;  %v2156_v43 = vsel %vm407_vm0, %v2866_v11, %v2867_v21 }
 0x2a6   :  { %2944 = vrot.lane.b32.xlu0 %v2943_v6, %s3007_s18 }
 0x2a9   :  { %2909 = vrot.lane.b32.xlu1 %v2908_v17, %s3006_s17 }
 0x2ae   :  { %2949 = vrot.lane.b32.xlu0 %v2948_v10, %s3006_s17 }
 0x2b1   :  { %2914 = vrot.lane.b32.xlu1 %v2913_v32, %s3009_s20  ;;  %v2871_v32 = vunpack.i.l.bf16 %v2870_v36  ;;  %v2822_v36 = vld [vmem:[%s3842_s6 + $0x7] sm:$0x1] }
 0x2b6   :  { %2954 = vrot.lane.b32.xlu0 %v2953_v53, %s3009_s20 }
 0x2b9   :  { %2919 = vrot.lane.b32.xlu1 %v2918_v58, %s3008_s19  ;;  %v2875_v58 = vpop.permute.xlu2 %2874 }
 0x2ba   :  { %v2876_v42 = vunpack.i.l.bf16 %v2875_v58 }
 0x2be   :  { %2964 = vrot.lane.b32.xlu0 %v2963_v19, %s3008_s19 }
 0x2c1   :  { %2646 = vperm.xlu1 %2847, %v2643_v27  }
 0x2f3   :  { %v2885_v29 = vpop.permute.xlu1 %2884 }
 0x2f4   :  { %v2887_v51 = vunpack.i.h.bf16 %v2885_v29  ;;  %v2886_v33 = vunpack.i.l.bf16 %v2885_v29 }
 0x2f6   :  { %v1933_v39 = vsel %vm110_vm14, %v2886_v33, %v2887_v51 }
 0x2f7   :  { %1975 = vmatpush.msrb.mxu3 %v1933_v39  ;;  %v2877_v39 = vunpack.i.h.bf16 %v2875_v58 }
 0x2f8   :  { %v2925_v37 = vpop.permute.xlu0 %2924 }
 0x2f9   :  { %v2927_v44 = vunpack.i.h.bf16 %v2925_v37  ;;  %v2926_v46 = vunpack.i.l.bf16 %v2925_v37  ;;  %1976 = vmatpush.msrb.mxu3 %v1931_v40  ;;  %v2330_v47 = vsel %vm613_vm3, %v2876_v42, %v2877_v39 }
 0x2fa   :  { %2804 = vmatmul.msk.f32.vlgmr.msrb.gmra.mxu3 %vm3863_vm9, %v2802_v26 }
 0x2fb   :  { %v2890_v55 = vpop.permute.xlu1 %2889  ;;  %v1932_v45 = vsel %vm110_vm14, %v2926_v46, %v2886_v33  ;;  %v1930_v4 = vsel %vm110_vm14, %v2927_v44, %v2851_v31  ;;  %vm3866_vm14 = vmmov %vm3857_vm4  ;;  %v2880_v46 = vpop.permute.xlu2 %2879 }
 0x2fc   :  { %v2892_v56 = vunpack.i.h.bf16 %v2890_v55  ;;  %v2891_v38 = vunpack.i.l.bf16 %v2890_v55  ;;  %1955 = vmatpush.msrb.mxu2 %v1932_v45  ;;  %v2816_v55 = vld [vmem:[%s3842_s6 + $0x5] sm:$0x1] }
 0x2fe   :  { %1956 = vmatpush.msrb.mxu2 %v1930_v4  ;;  %v2069_v48 = vsel %vm303_vm15, %v2891_v38, %v2892_v56 }
 0x2ff   :  { %2111 = vmatpush.msra.mxu3 %v2069_v48  ;;  %2803 = vmatmul.msk.f32.vlgmr.msrb.gmra.mxu2 %vm3864_vm10, %v2802_v26  ;;  %vm3875_vm10 = vmmov %vm3857_vm4  ;;  %v2882_v48 = vunpack.i.h.bf16 %v2880_v46 }
 0x300   :  { %v2930_v54 = vpop.permute.xlu0 %2929 }
 0x301   :  { %v2932_v14 = vunpack.i.h.bf16 %v2930_v54  ;;  %v2931_v5 = vunpack.i.l.bf16 %v2930_v54  ;;  %2112 = vmatpush.msra.mxu3 %v2067_v28 }
 0x302   :  { %2809 = vmatmul.msk.f32.vlgmr.msra.gmra.mxu3 %vm3865_vm11, %v2807_v57  ;;  %vm3876_vm11 = vmmov %vm3857_vm4 }
 0x303   :  { %v2895_v52 = vpop.permute.xlu1 %2894  ;;  %v2068_v63 = vsel %vm303_vm15, %v2931_v5, %v2891_v38  ;;  %v2066_v6 = vsel %vm303_vm15, %v2932_v14, %v2856_v60  ;;  %vm3868_vm15 = vmmov %vm3857_vm4  ;;  %v2825_v5 = vld [vmem:[%s3842_s6 + $0x8] sm:$0x1]  ;;  %v2960_v49 = vpop.permute.xlu2 %2959  ;;  %s3011_s6 = smov [#allocation3]  }
 0x304   :  { %v2897_v59 = vunpack.i.h.bf16 %v2895_v52  ;;  %v2896_v50 = vunpack.i.l.bf16 %v2895_v52  ;;  %2091 = vmatpush.msra.mxu2 %v2068_v63  ;;  %s2667_s27 = sshll.u32 %s3011_s6, 4  ;;  %s2668_s27 = int_to_ptr.vmem [resolvable:$true] %s2667_s27 }
 0x306   :  { %2092 = vmatpush.msra.mxu2 %v2066_v6  ;;  %v2245_v3 = vsel %vm510_vm2, %v2896_v50, %v2897_v59 }
 0x307   :  { %2287 = vmatpush.msrb.mxu3 %v2245_v3  ;;  %2808 = vmatmul.msk.f32.vlgmr.msra.gmra.mxu2 %vm3866_vm14, %v2807_v57  ;;  %v2881_v57 = vunpack.i.l.bf16 %v2880_v46  ;;  %vm3877_vm14 = vmmov %vm3857_vm4  ;;  %v2962_v3 = vunpack.i.h.bf16 %v2960_v49 }
 0x308   :  { %v2935_v12 = vpop.permute.xlu0 %2934 }
 0x309   :  { %v2937_v8 = vunpack.i.h.bf16 %v2935_v12  ;;  %v2936_v10 = vunpack.i.l.bf16 %v2935_v12  ;;  %2288 = vmatpush.msrb.mxu3 %v2243_v1  ;;  %v2591_v63 = vsel %vm922_vm6, %v2881_v57, %v2882_v48 }
 0x30a   :  { %2815 = vmatmul.msk.f32.vlgmr.msrb.gmra.mxu3 %vm3867_vm13, %v2813_v35  ;;  %vm3878_vm13 = vmmov %vm3857_vm4 }
 0x30b   :  { %v2900_v53 = vpop.permute.xlu1 %2899  ;;  %v2244_v19 = vsel %vm510_vm2, %v2936_v10, %v2896_v50  ;;  %v2242_v15 = vsel %vm510_vm2, %v2937_v8, %v2861_v41  ;;  %vm3870_vm2 = vcmask 785408  }
 0x30c   :  { %v2902_v0 = vunpack.i.h.bf16 %v2900_v53  ;;  %v2901_v25 = vunpack.i.l.bf16 %v2900_v53  ;;  %2267 = vmatpush.msrb.mxu2 %v2244_v19  ;;  %vm3871_vm7 = vmmov %vm3870_vm2 }
 0x30d   :  { %v2417_v22 = vsel %vm3871_vm7, %v2871_v32, %v2872_v20 }
 0x30e   :  { %2268 = vmatpush.msrb.mxu2 %v2242_v15  ;;  %v2158_v18 = vsel %vm407_vm0, %v2901_v25, %v2902_v0 }
 0x30f   :  { %2200 = vmatpush.msrb.mxu1 %v2158_v18  ;;  %2814 = vmatmul.msk.f32.vlgmr.msrb.gmra.mxu2 %vm3868_vm15, %v2813_v35  ;;  %v2961_v35 = vunpack.i.l.bf16 %v2960_v49 }
 0x310   :  { %v2940_v9 = vpop.permute.xlu0 %2939 }
 0x311   :  { %v2942_v13 = vunpack.i.h.bf16 %v2940_v9  ;;  %v2941_v16 = vunpack.i.l.bf16 %v2940_v9  ;;  %2201 = vmatpush.msrb.mxu1 %v2156_v43  ;;  %v2504_v19 = vsel %vm819_vm5, %v2961_v35, %v2962_v3  ;;  %v2001_v43 = vpop.f32.mrf.mxu0 }
 0x312   :  { %2812 = vmatmul.msk.f32.vlgmr.msrb.gmra.mxu1 %vm3869_vm12, %v2810_v7 }
 0x313   :  { %v2905_v17 = vpop.permute.xlu1 %2904  ;;  %v2157_v2 = vsel %vm407_vm0, %v2941_v16, %v2901_v25  ;;  %v2155_v27 = vsel %vm407_vm0, %v2942_v13, %v2866_v11  ;;  %vm3873_vm0 = vmmov %vm3870_vm2 }
 0x314   :  { %v2907_v61 = vunpack.i.h.bf16 %v2905_v17  ;;  %v2906_v23 = vunpack.i.l.bf16 %v2905_v17  ;;  %2180 = vmatpush.msrb.mxu0 %v2157_v2  ;;  %vm3874_vm9 = vmmov %vm3873_vm0 }
 0x316   :  { %2181 = vmatpush.msrb.mxu0 %v2155_v27  ;;  %v2419_v30 = vsel %vm3870_vm2, %v2906_v23, %v2907_v61 }
 0x317   :  { %2461 = vmatpush.msra.mxu3 %v2419_v30  ;;  %2811 = vmatmul.msk.f32.vlgmr.msrb.gmra.mxu0 %vm3857_vm4, %v2810_v7  ;;  %v2021_v7 = vpop.f32.mrf.mxu1 }
 0x318   :  { %v2945_v29 = vpop.permute.xlu0 %2944 }
 0x319   :  { %v2947_v31 = vunpack.i.h.bf16 %v2945_v29  ;;  %v2946_v51 = vunpack.i.l.bf16 %v2945_v29  ;;  %2462 = vmatpush.msra.mxu3 %v2417_v22 }
 0x31a   :  { %2821 = vmatmul.msk.f32.vlgmr.msra.gmra.mxu3 %vm3872_vm8, %v2819_v24 }
 0x31b   :  { %v2910_v33 = vpop.permute.xlu1 %2909  ;;  %v2418_v34 = vsel %vm3873_vm0, %v2946_v51, %v2906_v23  ;;  %v2416_v40 = vsel %vm3874_vm9, %v2947_v31, %v2871_v32 }
 0x31c   :  { %v2912_v26 = vunpack.i.h.bf16 %v2910_v33  ;;  %v2911_v37 = vunpack.i.l.bf16 %v2910_v33  ;;  %2441 = vmatpush.msra.mxu2 %v2418_v34 }
 0x31e   :  { %2442 = vmatpush.msra.mxu2 %v2416_v40  ;;  %v2332_v44 = vsel %vm613_vm3, %v2911_v37, %v2912_v26 }
 0x31f   :  { %2374 = vmatpush.msra.mxu1 %v2332_v44  ;;  %2820 = vmatmul.msk.f32.vlgmr.msra.gmra.mxu2 %vm3875_vm10, %v2819_v24 }
 0x320   :  { %v2950_v45 = vpop.permute.xlu0 %2949 }
 0x321   :  { %v2952_v60 = vunpack.i.h.bf16 %v2950_v45  ;;  %v2951_v56 = vunpack.i.l.bf16 %v2950_v45  ;;  %2375 = vmatpush.msra.mxu1 %v2330_v47 }
 0x322   :  { %2818 = vmatmul.msk.f32.vlgmr.msra.gmra.mxu1 %vm3876_vm11, %v2816_v55 }
 0x323   :  { %v2915_v38 = vpop.permute.xlu1 %2914  ;;  %v2331_v4 = vsel %vm613_vm3, %v2951_v56, %v2911_v37  ;;  %v2329_v62 = vsel %vm613_vm3, %v2952_v60, %v2876_v42  ;;  %vm3879_vm3 = vmmov %vm3857_vm4 }
 0x324   :  { %v2917_v54 = vunpack.i.h.bf16 %v2915_v38  ;;  %v2916_v28 = vunpack.i.l.bf16 %v2915_v38  ;;  %2354 = vmatpush.msra.mxu0 %v2331_v4  ;;  %vm3880_vm15 = vmmov %vm3879_vm3  ;;  %v2657_v4 = vlaneseq }
 0x326   :  { %2355 = vmatpush.msra.mxu0 %v2329_v62  ;;  %v2593_v14 = vsel %vm922_vm6, %v2916_v28, %v2917_v54 }
 0x327   :  { %2635 = vmatpush.msrb.mxu3 %v2593_v14  ;;  %2817 = vmatmul.msk.f32.vlgmr.msra.gmra.mxu0 %vm3877_vm14, %v2816_v55 }
 0x328   :  { %v2955_v52 = vpop.permute.xlu0 %2954 }
 0x329   :  { %v2957_v41 = vunpack.i.h.bf16 %v2955_v52  ;;  %v2956_v59 = vunpack.i.l.bf16 %v2955_v52  ;;  %2636 = vmatpush.msrb.mxu3 %v2591_v63 }
 0x32a   :  { %2827 = vmatmul.msk.f32.vlgmr.msrb.gmra.mxu3 %vm3878_vm13, %v2825_v5 }
 0x32b   :  { %v2920_v50 = vpop.permute.xlu1 %2919  ;;  %v2592_v6 = vsel %vm922_vm6, %v2956_v59, %v2916_v28  ;;  %v2590_v8 = vsel %vm922_vm6, %v2957_v41, %v2881_v57  ;;  %vm3881_vm6 = vmmov %vm3879_vm3 }
 0x32c   :  { %v2922_v12 = vunpack.i.h.bf16 %v2920_v50  ;;  %v2921_v1 = vunpack.i.l.bf16 %v2920_v50  ;;  %2615 = vmatpush.msrb.mxu2 %v2592_v6 }
 0x32e   :  { %2616 = vmatpush.msrb.mxu2 %v2590_v8  ;;  %v2506_v10 = vsel %vm819_vm5, %v2921_v1, %v2922_v12 }
 0x32f   :  { %2548 = vmatpush.msrb.mxu1 %v2506_v10  ;;  %2826 = vmatmul.msk.f32.vlgmr.msrb.gmra.mxu2 %vm3879_vm3, %v2825_v5 }
 0x330   :  { %v2965_v53 = vpop.permute.xlu0 %2964 }
 0x331   :  { %v2967_v21 = vunpack.i.h.bf16 %v2965_v53  ;;  %v2966_v11 = vunpack.i.l.bf16 %v2965_v53  ;;  %2549 = vmatpush.msrb.mxu1 %v2504_v19 }
 0x332   :  { %2824 = vmatmul.msk.f32.vlgmr.msrb.gmra.mxu1 %vm3880_vm15, %v2822_v36 }
 0x333   :  { %v2505_v0 = vsel %vm819_vm5, %v2966_v11, %v2921_v1  ;;  %v2503_v25 = vsel %vm819_vm5, %v2967_v21, %v2961_v35  ;;  %v2647_v40 = vpop.permute.xlu1 %2646  ;;  %vm2659_vm5 = vcmp.lt.s32.totalorder %v2657_v4, 256 }
 0x334   :  { %2528 = vmatpush.msrb.mxu0 %v2505_v0  ;;  %v2649_v55 = vperm.slane %v2647_v40, 0 }
 0x336   :  { %2529 = vmatpush.msrb.mxu0 %v2503_v25 }
 0x337   :  { %2823 = vmatmul.msk.f32.vlgmr.msrb.gmra.mxu0 %vm3881_vm6, %v2822_v36 }
 0x37d   :  { %v1978_v15 = vpop.f32.mrf.mxu3 }
 0x37e   :  { %v2022_v16 = vadd.f32 %v2021_v7, %v1978_v15 }
 0x382   :  { %v1958_v18 = vpop.f32.mrf.mxu2 }
 0x383   :  { %v2002_v32 = vadd.f32 %v2001_v43, %v1958_v18 }
 0x385   :  { %v2114_v9 = vpop.f32.mrf.mxu3 }
 0x386   :  { %v2118_v20 = vadd.f32 %v2114_v9, %v2022_v16 }
 0x38a   :  { %v2094_v13 = vpop.f32.mrf.mxu2 }
 0x38b   :  { %v2117_v27 = vadd.f32 %v2094_v13, %v2002_v32 }
 0x38d   :  { %v2290_v2 = vpop.f32.mrf.mxu3 }
 0x38f   :  { %v2203_v17 = vpop.f32.mrf.mxu1 }
 0x390   :  { %v2207_v61 = vadd.f32 %v2203_v17, %v2118_v20 }
 0x392   :  { %v2270_v58 = vpop.f32.mrf.mxu2  ;;  %v2294_v29 = vadd.f32 %v2290_v2, %v2207_v61 }
 0x394   :  { %v2183_v23 = vpop.f32.mrf.mxu0 }
 0x395   :  { %v2206_v22 = vadd.f32 %v2183_v23, %v2117_v27 }
 0x397   :  { %v2293_v34 = vadd.f32 %v2270_v58, %v2206_v22 }
 0x39d   :  { %v2464_v24 = vpop.f32.mrf.mxu3 }
 0x39f   :  { %v2377_v30 = vpop.f32.mrf.mxu1 }
 0x3a0   :  { %v2381_v31 = vadd.f32 %v2377_v30, %v2294_v29 }
 0x3a2   :  { %v2444_v33 = vpop.f32.mrf.mxu2  ;;  %v2468_v39 = vadd.f32 %v2464_v24, %v2381_v31 }
 0x3a4   :  { %v2357_v51 = vpop.f32.mrf.mxu0 }
 0x3a5   :  { %v2380_v42 = vadd.f32 %v2357_v51, %v2293_v34 }
 0x3a7   :  { %v2467_v45 = vadd.f32 %v2444_v33, %v2380_v42 }
 0x3ad   :  { %v2638_v37 = vpop.f32.mrf.mxu3 }
 0x3af   :  { %v2551_v26 = vpop.f32.mrf.mxu1 }
 0x3b0   :  { %v2555_v44 = vadd.f32 %v2551_v26, %v2468_v39 }
 0x3b2   :  { %v2642_v46 = vadd.f32 %v2638_v37, %v2555_v44  ;;  %v2618_v60 = vpop.f32.mrf.mxu2 }
 0x3b4   :  { %v2531_v47 = vpop.f32.mrf.mxu0  ;;  %v2651_v56 = vadd.f32 %v2649_v55, %v2642_v46 }
 0x3b5   :  { %v2554_v38 = vadd.f32 %v2531_v47, %v2467_v45 }
 0x3b6   :  { %v2654_v57 = vrot.slane %v2651_v56, 7 }
 0x3b7   :  { %v2641_v48 = vadd.f32 %v2618_v60, %v2554_v38 }
 0x3b9   :  { %v2650_v54 = vadd.f32 %v2649_v55, %v2641_v48 }
 0x3bb   :  { %v2655_v28 = vsel %vm1022_vm1, %v2650_v54, %v2654_v57 }
 0x3bc   :  { %2661 = vst.msk [vmem:[#allocation3] sm:$0x3] %vm2659_vm5, %v2655_v28 }
 0x3bd   :  { %2672 = dma.vmem_to_hbm [thread:$0]  %s2668_s27, 32, %s2670_s12, [#allocation4]  }
 0x3be   :  { %2992 = dma.done.wait [#allocation4], 32  }
 0x3bf   :  { %2993 = vsyncadd [#allocation4], 4294967264 }
 0x3c0   :  { %2677 = vsyncpa [#allocation4], 1 }

</bundles_post_ra>
